<compile_context>
chip_gen: v6e
topology: v6e:2x2x1
jax: 0.10.0
libtpu: 0.0.40
codegen_flags: <defaults>
</compile_context>

<pallas_src>
import math
import numpy as np
import jax
import jax.numpy as jnp
from jax.experimental import pallas as pl
from jax.experimental.pallas import tpu as pltpu

# ===== configuration (matches GlobFeatureWithMS defaults) =====
N_FFT = 512
HOP = 256                      # == N_FFT // 2, exploited for in-kernel framing
N_MELS = 80
SR = 16000
N_MFCC = 5
K = 10
LOG_OFFSET = 1e-6
N_FREQS = N_FFT // 2 + 1       # 257
F_PAD = 384                    # 257 padded to a multiple of 128
C_PAD = 8                      # 5 mfcc + mean + std padded to 8


# ---------------- deterministic parameter construction (numpy float64) ----------------
def hann_window(n):
    # torch.hann_window(n, periodic=True)
    return 0.5 * (1.0 - np.cos(2.0 * np.pi * np.arange(n) / n))


def dft_matrices(n_fft):
    n = np.arange(n_fft)[:, None].astype(np.float64)
    k = np.arange(n_fft // 2 + 1)[None, :].astype(np.float64)
    ang = 2.0 * np.pi * n * k / n_fft
    return np.cos(ang), -np.sin(ang)  # real / imag part of exp(-i*ang)


def melscale_fbanks(n_freqs, f_min, f_max, n_mels, sample_rate):
    # torchaudio.functional.melscale_fbanks, mel_scale='htk', norm=None
    def hz_to_mel(f):
        return 2595.0 * np.log10(1.0 + f / 700.0)

    def mel_to_hz(m):
        return 700.0 * (10.0 ** (m / 2595.0) - 1.0)

    all_freqs = np.linspace(0.0, sample_rate // 2, n_freqs)
    m_pts = np.linspace(hz_to_mel(f_min), hz_to_mel(f_max), n_mels + 2)
    f_pts = mel_to_hz(m_pts)
    f_diff = f_pts[1:] - f_pts[:-1]
    slopes = f_pts[None, :] - all_freqs[:, None]
    down = (-slopes[:, :-2]) / f_diff[:-1]
    up = slopes[:, 2:] / f_diff[1:]
    return np.maximum(0.0, np.minimum(down, up))  # (n_freqs, n_mels)


def create_dct(n_mfcc, n_mels):
    # torchaudio.functional.create_dct(norm=None), returned as (n_mels, n_mfcc)
    n = np.arange(n_mels)[None, :].astype(np.float64)
    k = np.arange(n_mfcc)[:, None].astype(np.float64)
    return (2.0 * np.cos(np.pi / n_mels * (n + 0.5) * k)).T


def dct2_matrix(n, k):
    # scipy.fftpack.dct type-2, norm=None, first k coefficients, as (n, k)
    m = np.arange(n)[:, None].astype(np.float64)
    kk = np.arange(k)[None, :].astype(np.float64)
    return 2.0 * np.cos(np.pi * kk * (2.0 * m + 1.0) / (2.0 * n))


def dst2_matrix(n, k):
    # scipy.fftpack.dst type-2, norm=None, first k coefficients, as (n, k)
    m = np.arange(n)[:, None].astype(np.float64)
    kk = np.arange(k)[None, :].astype(np.float64)
    return 2.0 * np.sin(np.pi * (kk + 1.0) * (2.0 * m + 1.0) / (2.0 * n))


# ---------------- fused Pallas kernel ----------------
def glob_feature_kernel(lo_ref, hi_ref, wcos_ref, wsin_ref, mel_ref, dctm_ref,
                        transT_ref, out_ref, feat_ref):
    # grid = (B, T_tiles); T axis accumulates into out_ref (same block per b).
    t = pl.program_id(1)

    @pl.when(t == 0)
    def _():
        out_ref[...] = jnp.zeros_like(out_ref)

    # Rebuild windowed frames from two non-overlapping half-chunks (HOP = N_FFT/2).
    # The hann window is folded into wcos/wsin, so no elementwise window multiply.
    frames = jnp.concatenate([lo_ref[0], hi_ref[0]], axis=-1)      # (tile_T, 512) f32
    frames = frames.astype(jnp.bfloat16)                            # MXU-native inputs
    tile_t = frames.shape[0]

    # real DFT as MXU matmuls (bf16 in, f32 accumulate); freq axis zero-padded to 384
    re = jnp.dot(frames, wcos_ref[...], preferred_element_type=jnp.float32)
    im = jnp.dot(frames, wsin_ref[...], preferred_element_type=jnp.float32)
    p2 = re * re + im * im          # power = 2 spectrogram
    mag = jnp.sqrt(p2)              # power = 1 spectrogram

    # one mel projection for both branches (rows stacked -> larger M on the MXU)
    mel = jnp.dot(jnp.concatenate([mag, p2], axis=0), mel_ref[...],
                  preferred_element_type=jnp.float32)               # (2*tile_T, 80)
    mel1 = mel[:tile_t]             # power=1 branch (FreqMeanSpread)
    mel2 = mel[tile_t:]             # power=2 branch (MFCC)

    # MFCC branch
    logmel = jnp.log(mel2 + LOG_OFFSET)
    mfcc = jnp.dot(logmel, dctm_ref[...], preferred_element_type=jnp.float32)

    # FreqMeanSpread branch (unbiased std over the mel axis)
    mu = jnp.mean(mel1, axis=-1, keepdims=True)
    var = jnp.sum((mel1 - mu) ** 2, axis=-1, keepdims=True) / (N_MELS - 1)
    sd = jnp.sqrt(var)

    # merged, lane-padded per-frame feature: columns [mfcc(5), mean, std, 0-pad]
    nm = mfcc.shape[-1]
    feat_ref[:, :nm] = mfcc
    feat_ref[:, nm:nm + 1] = mu
    feat_ref[:, nm + 1:nm + 2] = sd
    if nm + 2 < C_PAD:
        feat_ref[:, nm + 2:] = jnp.zeros((tile_t, C_PAD - nm - 2), jnp.float32)

    # fused time-axis DCT-II / DST-II: outT[j, c] += sum_t trans[j, t] * feat[t, c]
    out_ref[0] += jnp.dot(transT_ref[...], feat_ref[...],
                          preferred_element_type=jnp.float32)


# ---------------- wrapper ----------------
class GlobFeatureWithMSPallas:
    def __init__(self, n_mfcc=N_MFCC, k=K):
        assert n_mfcc + 2 <= C_PAD
        self.n_mfcc = n_mfcc
        self.k = k

        win = hann_window(N_FFT)
        cos_m, sin_m = dft_matrices(N_FFT)                         # (512, 257)
        wcos = np.zeros((N_FFT, F_PAD))
        wsin = np.zeros((N_FFT, F_PAD))
        wcos[:, :N_FREQS] = win[:, None] * cos_m                   # window folded in
        wsin[:, :N_FREQS] = win[:, None] * sin_m
        self.wcos = jnp.asarray(wcos, jnp.bfloat16)
        self.wsin = jnp.asarray(wsin, jnp.bfloat16)

        mel = np.zeros((F_PAD, N_MELS))
        mel[:N_FREQS] = melscale_fbanks(N_FREQS, 0.0, SR / 2.0, N_MELS, SR)
        self.mel_fb = jnp.asarray(mel, jnp.float32)
        self.dct_mfcc = jnp.asarray(create_dct(n_mfcc, N_MELS), jnp.float32)

    def __call__(self, wav):
        B, L = wav.shape
        T = (L - N_FFT) // HOP + 1
        kk = min(self.k, T)
        C = self.n_mfcc + 2

        # T tiling: full-T tile (rounded to 8) for small T, 256-frame tiles otherwise.
        if T <= 256:
            tile_t = int(math.ceil(T / 8) * 8)
            n_t = 1
        else:
            tile_t = 256
            n_t = int(math.ceil(T / 256))
        T_pad = tile_t * n_t

        # non-overlapping half-frame chunks; frames are assembled inside the kernel
        lo = wav[:, :T * HOP].reshape(B, T, HOP)
        hi = wav[:, HOP:(T + 1) * HOP].reshape(B, T, HOP)
        if T_pad > T:
            pad = ((0, 0), (0, T_pad - T), (0, 0))
            lo = jnp.pad(lo, pad)
            hi = jnp.pad(hi, pad)

        # time transform, transposed: (2k, T_pad); zero cols for padded frames
        transT = np.zeros((2 * kk, T_pad))
        transT[:kk, :T] = dct2_matrix(T, kk).T
        transT[kk:, :T] = dst2_matrix(T, kk).T
        transT = jnp.asarray(transT, jnp.float32)

        flops = int(B * T_pad * (4 * N_FFT * F_PAD + 4 * F_PAD * N_MELS
                                 + 2 * N_MELS * self.n_mfcc
                                 + 2 * C_PAD * 2 * kk))
        transc = int(B * T_pad * (F_PAD + N_MELS + 1))
        bytes_acc = int(4 * (2 * B * T_pad * HOP + F_PAD * N_MELS
                             + N_MELS * self.n_mfcc + 2 * kk * T_pad
                             + B * 2 * kk * C_PAD)
                        + 2 * 2 * N_FFT * F_PAD)

        grid_spec = pltpu.PrefetchScalarGridSpec(
            num_scalar_prefetch=0,
            grid=(B, n_t),
            in_specs=[
                pl.BlockSpec((1, tile_t, HOP), lambda b, t: (b, t, 0)),      # lo chunks
                pl.BlockSpec((1, tile_t, HOP), lambda b, t: (b, t, 0)),      # hi chunks
                pl.BlockSpec((N_FFT, F_PAD), lambda b, t: (0, 0)),           # wcos
                pl.BlockSpec((N_FFT, F_PAD), lambda b, t: (0, 0)),           # wsin
                pl.BlockSpec((F_PAD, N_MELS), lambda b, t: (0, 0)),          # mel fbank
                pl.BlockSpec((N_MELS, self.n_mfcc), lambda b, t: (0, 0)),    # mfcc dct
                pl.BlockSpec((2 * kk, tile_t), lambda b, t: (0, t)),         # time dct/dst
            ],
            out_specs=pl.BlockSpec((1, 2 * kk, C_PAD), lambda b, t: (b, 0, 0)),
            scratch_shapes=[pltpu.VMEM((tile_t, C_PAD), jnp.float32)],
        )

        out = pl.pallas_call(
            glob_feature_kernel,
            out_shape=jax.ShapeDtypeStruct((B, 2 * kk, C_PAD), jnp.float32),
            grid_spec=grid_spec,
            compiler_params=pltpu.CompilerParams(
                dimension_semantics=("parallel", "arbitrary")),
            cost_estimate=pl.CostEstimate(
                flops=flops, transcendentals=transc, bytes_accessed=bytes_acc),
        )(lo, hi, self.wcos, self.wsin, self.mel_fb, self.dct_mfcc, transT)

        # (B, 2k, C_pad) -> drop pad channel, channel-major flatten (torch semantics)
        res = jnp.transpose(out[:, :, :C], (0, 2, 1))
        return res.reshape(B, C * 2 * kk)


# ---------------- float64 numpy reference (same math, no Pallas) ----------------
def reference_numpy(wav):
    wav = np.asarray(wav, np.float64)
    B, L = wav.shape
    T = (L - N_FFT) // HOP + 1
    win = hann_window(N_FFT)
    cos_m, sin_m = dft_matrices(N_FFT)
    mel_fb = melscale_fbanks(N_FREQS, 0.0, SR / 2.0, N_MELS, SR)
    dctm = create_dct(N_MFCC, N_MELS)
    idx = np.arange(T)[:, None] * HOP + np.arange(N_FFT)[None, :]
    frames = wav[:, idx] * win
    re = frames @ cos_m
    im = frames @ sin_m
    p2 = re ** 2 + im ** 2
    mag = np.sqrt(p2)
    mel1 = mag @ mel_fb
    mel2 = p2 @ mel_fb
    mfcc = np.log(mel2 + LOG_OFFSET) @ dctm
    mean = mel1.mean(-1, keepdims=True)
    std = mel1.std(-1, ddof=1, keepdims=True)
    feat = np.concatenate([mfcc, mean, std], -1).transpose(0, 2, 1)
    kk = min(K, T)
    out = np.concatenate([feat @ dct2_matrix(T, kk), feat @ dst2_matrix(T, kk)], -1)
    return out.reshape(B, -1)


if __name__ == "__main__":
    B = 2
    T = 16
    L = N_FFT + HOP * (T - 1)  # 4352 samples -> 16 STFT frames (center=False)
    wav = jax.random.normal(jax.random.PRNGKey(0), (B, L), dtype=jnp.float32)

    model = GlobFeatureWithMSPallas()
    out = jax.jit(model.__call__)(wav)
    out = jax.block_until_ready(out)

    ref = reference_numpy(np.asarray(wav))
    assert out.shape == (B, (N_MFCC + 2) * 2 * min(K, T)), out.shape
    assert np.isfinite(np.asarray(out)).all()
    rel_err = np.max(np.abs(np.asarray(out, np.float64) - ref)) / (np.max(np.abs(ref)) + 1e-9)
    assert rel_err < 2e-2, f"relative error too large: {rel_err}"
    print("KERNEL_OK")
</pallas_src>

<mosaic_0001>
module attributes {stable_mosaic.version = 11 : i64} {
  func.func @glob_feature_kernel(%arg0: i32, %arg1: i32, %arg2: memref<1x16x256xf32, #tpu.memory_space<vmem>>, %arg3: memref<1x16x256xf32, #tpu.memory_space<vmem>>, %arg4: memref<512x384xbf16, #tpu.memory_space<vmem>>, %arg5: memref<512x384xbf16, #tpu.memory_space<vmem>>, %arg6: memref<384x80xf32, #tpu.memory_space<vmem>>, %arg7: memref<80x5xf32, #tpu.memory_space<vmem>>, %arg8: memref<20x16xf32, #tpu.memory_space<vmem>>, %arg9: memref<1x20x8xf32, #tpu.memory_space<vmem>>, %arg10: memref<16x8xf32, #tpu.memory_space<vmem>>) attributes {dimension_semantics = [#tpu.dimension_semantics<parallel>, #tpu.dimension_semantics<arbitrary>], iteration_bounds = array<i64: 2, 1>, scalar_prefetch = 0 : i64, scratch_operands = 1 : i64, tpu.core_type = #tpu.core_type<tc>, window_params = [{transform_indices = @transform_0, window_bounds = array<i64: 1, 16, 256>}, {transform_indices = @transform_1, window_bounds = array<i64: 1, 16, 256>}, {pipeline_mode = #tpu.pipeline_mode<synchronous>, transform_indices = @transform_2, window_bounds = array<i64: 512, 384>}, {pipeline_mode = #tpu.pipeline_mode<synchronous>, transform_indices = @transform_3, window_bounds = array<i64: 512, 384>}, {pipeline_mode = #tpu.pipeline_mode<synchronous>, transform_indices = @transform_4, window_bounds = array<i64: 384, 80>}, {pipeline_mode = #tpu.pipeline_mode<synchronous>, transform_indices = @transform_5, window_bounds = array<i64: 80, 5>}, {transform_indices = @transform_6, window_bounds = array<i64: 20, 16>}, {transform_indices = @transform_7, window_bounds = array<i64: 1, 20, 8>}]} {
    %c0_i32 = arith.constant 0 : i32
    %0 = arith.cmpi eq, %arg1, %c0_i32 : i32
    %1 = arith.extui %0 : i1 to i32
    %c0_i32_0 = arith.constant 0 : i32
    %2 = arith.cmpi ne, %1, %c0_i32_0 : i32
    scf.if %2 {
      %cst_39 = arith.constant 0.000000e+00 : f32
      %53 = vector.broadcast %cst_39 : f32 to vector<1x20x8xf32>
      %c0_40 = arith.constant 0 : index
      %c0_41 = arith.constant 0 : index
      %c0_42 = arith.constant 0 : index
      %54 = vector.load %arg9[%c0_40, %c0_41, %c0_42] : memref<1x20x8xf32, #tpu.memory_space<vmem>>, vector<1x20x8xf32>
      tpu.vector_store %arg9[%c0_40, %c0_41, %c0_42], %53 {strides = array<i32>} : memref<1x20x8xf32, #tpu.memory_space<vmem>>, vector<1x20x8xf32>,
    } else {
    }
    %c0 = arith.constant 0 : index
    %c0_1 = arith.constant 0 : index
    %c0_2 = arith.constant 0 : index
    %3 = vector.load %arg2[%c0, %c0_1, %c0_2] : memref<1x16x256xf32, #tpu.memory_space<vmem>>, vector<1x16x256xf32>
    %4 = vector.shape_cast %3 : vector<1x16x256xf32> to vector<16x256xf32>
    %c0_3 = arith.constant 0 : index
    %c0_4 = arith.constant 0 : index
    %c0_5 = arith.constant 0 : index
    %5 = vector.load %arg3[%c0_3, %c0_4, %c0_5] : memref<1x16x256xf32, #tpu.memory_space<vmem>>, vector<1x16x256xf32>
    %6 = vector.shape_cast %5 : vector<1x16x256xf32> to vector<16x256xf32>
    %7 = tpu.concatenate %4, %6 in 1 : vector<16x256xf32>, vector<16x256xf32> -> vector<16x512xf32>
    %8 = arith.truncf %7 : vector<16x512xf32> to vector<16x512xbf16>
    %c0_6 = arith.constant 0 : index
    %c0_7 = arith.constant 0 : index
    %9 = vector.load %arg4[%c0_6, %c0_7] : memref<512x384xbf16, #tpu.memory_space<vmem>>, vector<512x384xbf16>
    %cst = arith.constant dense<0.000000e+00> : vector<16x384xf32>
    %10 = tpu.matmul %8, %9, %cst {dimension_numbers = #tpu.dot_dimension_numbers<[1], [0], [0], [1], [0, 0, 1, 1], [], []>} : vector<16x512xbf16>, vector<512x384xbf16>, vector<16x384xf32> -> vector<16x384xf32>
    %c0_8 = arith.constant 0 : index
    %c0_9 = arith.constant 0 : index
    %11 = vector.load %arg5[%c0_8, %c0_9] : memref<512x384xbf16, #tpu.memory_space<vmem>>, vector<512x384xbf16>
    %cst_10 = arith.constant dense<0.000000e+00> : vector<16x384xf32>
    %12 = tpu.matmul %8, %11, %cst_10 {dimension_numbers = #tpu.dot_dimension_numbers<[1], [0], [0], [1], [0, 0, 1, 1], [], []>} : vector<16x512xbf16>, vector<512x384xbf16>, vector<16x384xf32> -> vector<16x384xf32>
    %13 = arith.mulf %10, %10 : vector<16x384xf32>
    %14 = arith.mulf %12, %12 : vector<16x384xf32>
    %15 = arith.addf %13, %14 : vector<16x384xf32>
    %16 = math.sqrt %15 : vector<16x384xf32>
    %17 = tpu.concatenate %16, %15 in 0 : vector<16x384xf32>, vector<16x384xf32> -> vector<32x384xf32>
    %c0_11 = arith.constant 0 : index
    %c0_12 = arith.constant 0 : index
    %18 = vector.load %arg6[%c0_11, %c0_12] : memref<384x80xf32, #tpu.memory_space<vmem>>, vector<384x80xf32>
    %cst_13 = arith.constant dense<0.000000e+00> : vector<32x80xf32>
    %19 = tpu.matmul %17, %18, %cst_13 {dimension_numbers = #tpu.dot_dimension_numbers<[1], [0], [0], [1], [0, 0, 1, 1], [], []>} : vector<32x384xf32>, vector<384x80xf32>, vector<32x80xf32> -> vector<32x80xf32>
    %20 = vector.extract_strided_slice %19 {offsets = [0, 0], sizes = [16, 80], strides = [1, 1]} : vector<32x80xf32> to vector<16x80xf32>
    %21 = vector.extract_strided_slice %19 {offsets = [16, 0], sizes = [16, 80], strides = [1, 1]} : vector<32x80xf32> to vector<16x80xf32>
    %cst_14 = arith.constant 9.99999997E-7 : f32
    %22 = vector.broadcast %cst_14 : f32 to vector<16x80xf32>
    %23 = arith.addf %21, %22 : vector<16x80xf32>
    %24 = math.log %23 : vector<16x80xf32>
    %c0_15 = arith.constant 0 : index
    %c0_16 = arith.constant 0 : index
    %25 = vector.load %arg7[%c0_15, %c0_16] : memref<80x5xf32, #tpu.memory_space<vmem>>, vector<80x5xf32>
    %cst_17 = arith.constant dense<0.000000e+00> : vector<16x5xf32>
    %26 = tpu.matmul %24, %25, %cst_17 {dimension_numbers = #tpu.dot_dimension_numbers<[1], [0], [0], [1], [0, 0, 1, 1], [], []>} : vector<16x80xf32>, vector<80x5xf32>, vector<16x5xf32> -> vector<16x5xf32>
    %cst_18 = arith.constant dense<0.000000e+00> : vector<16xf32>
    %27 = vector.multi_reduction <add>, %20, %cst_18 [1] : vector<16x80xf32> to vector<16xf32>
    %28 = vector.shape_cast %27 : vector<16xf32> to vector<16x1xf32>
    %cst_19 = arith.constant 8.000000e+01 : f32
    %29 = vector.broadcast %cst_19 : f32 to vector<16x1xf32>
    %30 = arith.divf %28, %29 : vector<16x1xf32>
    %31 = vector.broadcast %30 : vector<16x1xf32> to vector<16x80xf32>
    %32 = arith.subf %20, %31 : vector<16x80xf32>
    %33 = arith.mulf %32, %32 : vector<16x80xf32>
    %cst_20 = arith.constant dense<0.000000e+00> : vector<16xf32>
    %34 = vector.multi_reduction <add>, %33, %cst_20 [1] : vector<16x80xf32> to vector<16xf32>
    %35 = vector.shape_cast %34 : vector<16xf32> to vector<16x1xf32>
    %cst_21 = arith.constant 7.900000e+01 : f32
    %36 = vector.broadcast %cst_21 : f32 to vector<16x1xf32>
    %37 = arith.divf %35, %36 : vector<16x1xf32>
    %38 = math.sqrt %37 : vector<16x1xf32>
    %c0_22 = arith.constant 0 : index
    %c0_23 = arith.constant 0 : index
    %39 = vector.load %arg10[%c0_22, %c0_23] : memref<16x8xf32, #tpu.memory_space<vmem>>, vector<16x5xf32>
    tpu.vector_store %arg10[%c0_22, %c0_23], %26 {strides = array<i32>} : memref<16x8xf32, #tpu.memory_space<vmem>>, vector<16x5xf32>,
    %c0_24 = arith.constant 0 : index
    %c5 = arith.constant 5 : index
    %40 = vector.load %arg10[%c0_24, %c5] : memref<16x8xf32, #tpu.memory_space<vmem>>, vector<16x1xf32>
    tpu.vector_store %arg10[%c0_24, %c5], %30 {strides = array<i32>} : memref<16x8xf32, #tpu.memory_space<vmem>>, vector<16x1xf32>,
    %c0_25 = arith.constant 0 : index
    %c6 = arith.constant 6 : index
    %41 = vector.load %arg10[%c0_25, %c6] : memref<16x8xf32, #tpu.memory_space<vmem>>, vector<16x1xf32>
    tpu.vector_store %arg10[%c0_25, %c6], %38 {strides = array<i32>} : memref<16x8xf32, #tpu.memory_space<vmem>>, vector<16x1xf32>,
    %cst_26 = arith.constant 0.000000e+00 : f32
    %42 = vector.broadcast %cst_26 : f32 to vector<16x1xf32>
    %c0_27 = arith.constant 0 : index
    %c7 = arith.constant 7 : index
    %43 = vector.load %arg10[%c0_27, %c7] : memref<16x8xf32, #tpu.memory_space<vmem>>, vector<16x1xf32>
    tpu.vector_store %arg10[%c0_27, %c7], %42 {strides = array<i32>} : memref<16x8xf32, #tpu.memory_space<vmem>>, vector<16x1xf32>,
    %c0_28 = arith.constant 0 : index
    %c0_29 = arith.constant 0 : index
    %c0_30 = arith.constant 0 : index
    %44 = vector.load %arg9[%c0_28, %c0_29, %c0_30] : memref<1x20x8xf32, #tpu.memory_space<vmem>>, vector<1x20x8xf32>
    %45 = vector.shape_cast %44 : vector<1x20x8xf32> to vector<20x8xf32>
    %c0_31 = arith.constant 0 : index
    %c0_32 = arith.constant 0 : index
    %46 = vector.load %arg8[%c0_31, %c0_32] : memref<20x16xf32, #tpu.memory_space<vmem>>, vector<20x16xf32>
    %c0_33 = arith.constant 0 : index
    %c0_34 = arith.constant 0 : index
    %47 = vector.load %arg10[%c0_33, %c0_34] : memref<16x8xf32, #tpu.memory_space<vmem>>, vector<16x8xf32>
    %cst_35 = arith.constant dense<0.000000e+00> : vector<20x8xf32>
    %48 = tpu.matmul %46, %47, %cst_35 {dimension_numbers = #tpu.dot_dimension_numbers<[1], [0], [0], [1], [0, 0, 1, 1], [], []>} : vector<20x16xf32>, vector<16x8xf32>, vector<20x8xf32> -> vector<20x8xf32>
    %49 = arith.addf %45, %48 : vector<20x8xf32>
    %c0_36 = arith.constant 0 : index
    %c0_37 = arith.constant 0 : index
    %c0_38 = arith.constant 0 : index
    %50 = vector.load %arg9[%c0_36, %c0_37, %c0_38] : memref<1x20x8xf32, #tpu.memory_space<vmem>>, vector<1x20x8xf32>
    %51 = vector.shape_cast %50 : vector<1x20x8xf32> to vector<20x8xf32>
    %52 = vector.shape_cast %49 : vector<20x8xf32> to vector<1x20x8xf32>
    tpu.vector_store %arg9[%c0_36, %c0_37, %c0_38], %52 {strides = array<i32>} : memref<1x20x8xf32, #tpu.memory_space<vmem>>, vector<1x20x8xf32>,
    return
  }
  func.func @transform_0(%arg0: i32, %arg1: i32) -> (i32, i32, i32) {
    %c0_i32 = arith.constant 0 : i32
    %c0_i32_0 = arith.constant 0 : i32
    return %arg0, %arg1, %c0_i32 : i32, i32, i32
  }
  func.func @transform_1(%arg0: i32, %arg1: i32) -> (i32, i32, i32) {
    %c0_i32 = arith.constant 0 : i32
    %c0_i32_0 = arith.constant 0 : i32
    return %arg0, %arg1, %c0_i32 : i32, i32, i32
  }
  func.func @transform_2(%arg0: i32, %arg1: i32) -> (i32, i32) {
    %c0_i32 = arith.constant 0 : i32
    %c0_i32_0 = arith.constant 0 : i32
    %c0_i32_1 = arith.constant 0 : i32
    return %c0_i32, %c0_i32_0 : i32, i32
  }
  func.func @transform_3(%arg0: i32, %arg1: i32) -> (i32, i32) {
    %c0_i32 = arith.constant 0 : i32
    %c0_i32_0 = arith.constant 0 : i32
    %c0_i32_1 = arith.constant 0 : i32
    return %c0_i32, %c0_i32_0 : i32, i32
  }
  func.func @transform_4(%arg0: i32, %arg1: i32) -> (i32, i32) {
    %c0_i32 = arith.constant 0 : i32
    %c0_i32_0 = arith.constant 0 : i32
    %c0_i32_1 = arith.constant 0 : i32
    return %c0_i32, %c0_i32_0 : i32, i32
  }
  func.func @transform_5(%arg0: i32, %arg1: i32) -> (i32, i32) {
    %c0_i32 = arith.constant 0 : i32
    %c0_i32_0 = arith.constant 0 : i32
    %c0_i32_1 = arith.constant 0 : i32
    return %c0_i32, %c0_i32_0 : i32, i32
  }
  func.func @transform_6(%arg0: i32, %arg1: i32) -> (i32, i32) {
    %c0_i32 = arith.constant 0 : i32
    %c0_i32_0 = arith.constant 0 : i32
    return %c0_i32, %arg1 : i32, i32
  }
  func.func @transform_7(%arg0: i32, %arg1: i32) -> (i32, i32, i32) {
    %c0_i32 = arith.constant 0 : i32
    %c0_i32_0 = arith.constant 0 : i32
    %c0_i32_1 = arith.constant 0 : i32
    return %arg0, %c0_i32, %c0_i32_0 : i32, i32, i32
  }
}

</mosaic_0001>

<bundles_post_ra>
// kernel: a_call__.1
= control target key start
LH: loop header
LB: loop body
LE: loop exit
PB: predicated region body
PF: predicated region fallthrough
CT: control target
= control target key end

     0   :  { %12 = vsyncpa [#allocation4], 0  ;;  %s3970_s0 = inlined_call_operand.vmem [shape: f32[2,16,256], index: 0, kind: input, shape index: {}]   ;;  %s3971_s1 = inlined_call_operand.vmem [shape: f32[2,16,256], index: 1, kind: input, shape index: {}]   ;;  %s3972_s2 = inlined_call_operand.hbm [shape: bf16[512,384], index: 2, kind: input, shape index: {}]   ;;  %s3973_s3 = inlined_call_operand.hbm [shape: bf16[512,384], index: 3, kind: input, shape index: {}]   ;;  %s3974_s4 = inlined_call_operand.vmem [shape: f32[384,80], index: 4, kind: input, shape index: {}]   ;;  %s3975_s5 = inlined_call_operand.vmem [shape: f32[80,5], index: 5, kind: input, shape index: {}]   ;;  %s3976_s6 = inlined_call_operand.vmem [shape: f32[20,16], index: 6, kind: input, shape index: {}]   ;;  %s3977_s7 = inlined_call_operand.vmem [shape: f32[2,20,8], index: 7, kind: output, shape index: {}]  }
   0x1   :  { %13 = vsyncpa [#allocation6], 0  ;;  %s3610_s24 = smov 0   ;;  %s3612_s25 = smov 0  }
   0x2   :  { %s3614_s26 = smov 0  }
   0x3 LB: > { %s2695_s27 = sadd.s32 4294967295, %s3562_s26   ;;  %s31_s28 = sadd.s32 1, %s3558_s25  ;;  %s3562_s26 = sphi %s3614_s26, %s19_s26   ;;  %s3558_s25 = sphi %s3612_s25, %s3982_s25   ;;  %s3554_s24 = sphi %s3610_s24, %s3981_s24  }
   0x4   : > { %p33_p0 = scmp.ge.s32.totalorder %s31_s28, 2  ;;  %p2697_p1 = scmp.ge.s32.totalorder %s3562_s26, 1 }
   0x5   : > { %p228_p2 = scmp.lt.s32.totalorder %s3562_s26, 3  ;;  %p3635_p4 = scmp.eq.s32.totalorder %s2695_s27, 0 }
   0x6   : > { %s3984_s28 = smov (%p33_p0, %s31_s28), 0  ;;  %s3564_s8 = smov [#allocation3]  }
   0x7   : > { %p3631_p3 = pnand %p2697_p1, %p228_p2  ;;  %s240_s9 = sshll.u32 %s3564_s8, 4  ;;  %s241_s9 = int_to_ptr.vmem [resolvable:$true] %s240_s9 }
   0x8   : > { %s3565_s11 = smov [#allocation5]   ;;  %s3491_s13 = scalar_lea.vmem %s241_s9, 12288 }
   0x9   : > { %p3163_p5 = pneg %p3631_p3  ;;  %s253_s12 = sshll.u32 %s3565_s11, 4  ;;  %s254_s12 = int_to_ptr.vmem [resolvable:$true] %s253_s12 }
   0xa   : > { %p3492_p8 = scmp.ne.s32.totalorder %s241_s9, %s3491_s13  ;;  %p3499_p11 = scmp.lt.s32.totalorder %s241_s9, %s241_s9 }
   0xb   : > { %p3643_p6 = pnand %p3635_p4, %p3163_p5  ;;  %p3500_p12 = scmp.lt.s32.totalorder %s3491_s13, %s3491_s13 }
   0xd   : > { %p3482_p7 = pneg %p3643_p6  ;;  %p3501_p13 = por %p3500_p12, %p3499_p11 }
   0xf   : > { %p3494_p9 = pnand %p3492_p8, %p3482_p7 }
  0x11   : > { %p3495_p10 = pneg %p3494_p9 }
  0x13   : > { %p3502_p0 = pnand %p3501_p13, %p3495_p10 }
  0x15   : > { %3505 = shalt.err (!%p3502_p0)
}
  0x16   : > { %s3566_s14 = smov 192   ;;  %s3567_s15 = smov 12  }
  0x17   : > { %3166 = dma.hbm_to_vmem [thread:$0]  (!%p3643_p6), %s3972_s2, 12288, %s241_s9, [#allocation4], %s3566_s14, %s3566_s14, %s3567_s15  }
  0x18   : > { %s3517_s18 = scalar_lea.vmem %s254_s12, 12288  ;;  %p3525_p8 = scmp.lt.s32.totalorder %s254_s12, %s254_s12 }
  0x19   : > { %p3518_p1 = scmp.ne.s32.totalorder %s254_s12, %s3517_s18  ;;  %p3526_p9 = scmp.lt.s32.totalorder %s3517_s18, %s3517_s18 }
  0x1b   : > { %p3520_p2 = pnand %p3518_p1, %p3482_p7  ;;  %p3527_p11 = por %p3526_p9, %p3525_p8 }
  0x1d   : > { %p3521_p5 = pneg %p3520_p2 }
  0x1f   : > { %p3528_p10 = pnand %p3527_p11, %p3521_p5 }
  0x21   : > { %3531 = shalt.err (!%p3528_p10)
}
  0x22   : > { %3169 = dma.hbm_to_vmem [thread:$0]  (!%p3643_p6), %s3973_s3, 12288, %s254_s12, [#allocation6], %s3566_s14, %s3566_s14, %s3567_s15  }
  0x23   : > { %310 = sbr.rel (%p3631_p3) target bundleno = 1179 (0x49b), region = 48 }
  0x28   : > { %3545 = dma.done.wait (%p3635_p4), [#allocation4], 12288  }
  0x29   : > { %3547 = vsyncadd (%p3635_p4), [#allocation4], 4294955008 }
  0x2a   : > { %3549 = dma.done.wait (%p3635_p4), [#allocation6], 12288  }
  0x2b   : > { %3551 = vsyncadd (%p3635_p4), [#allocation6], 4294955008  ;;  %v3204_v0 = vld [vmem:[#allocation3 + $0xac] ss:$12 sps:$4 sm:$0xff]   ;;  %v3208_v2 = vld [vmem:[#allocation3 + $0xa8] ss:$12 sps:$4 sm:$0xff]  }
  0x2c   : > { %v3206_v1 = vld [vmem:[#allocation3 + $0x22c] ss:$12 sps:$4 sm:$0xff]   ;;  %1058 = vmatprep.subr.bf16.mxu0 %v3204_v0  ;;  %v3209_v3 = vld [vmem:[#allocation3 + $0x228] ss:$12 sps:$4 sm:$0xff]   ;;  %v3214_v6 = vld [vmem:[#allocation3 + $0x90] ss:$12 sps:$4 sm:$0xff]  }
  0x2d   : > { %1101 = vmatprep.subr.bf16.mxu1 %v3206_v1  ;;  %v3210_v4 = vld [vmem:[#allocation3 + $0x94] ss:$12 sps:$4 sm:$0xff]   ;;  %1059 = vmatpush1.bf16.msra.mxu0 %v3208_v2  ;;  %v3215_v7 = vld [vmem:[#allocation3 + $0x210] ss:$12 sps:$4 sm:$0xff]   ;;  %v3220_v10 = vld [vmem:[#allocation3 + $0x78] ss:$12 sps:$4 sm:$0xff]  }
  0x2e   : > { %1102 = vmatpush1.bf16.msra.mxu1 %v3209_v3  ;;  %v3212_v5 = vld [vmem:[#allocation3 + $0x214] ss:$12 sps:$4 sm:$0xff]   ;;  %1060 = vmatprep.subr.bf16.mxu0 %v3210_v4  ;;  %v3216_v8 = vld [vmem:[#allocation3 + $0x7c] ss:$12 sps:$4 sm:$0xff]   ;;  %v3221_v11 = vld [vmem:[#allocation3 + $0x1f8] ss:$12 sps:$4 sm:$0xff]  }
  0x2f   : > { %1103 = vmatprep.subr.bf16.mxu1 %v3212_v5  ;;  %v3218_v9 = vld [vmem:[#allocation3 + $0x1fc] ss:$12 sps:$4 sm:$0xff]   ;;  %v3222_v12 = vld [vmem:[#allocation3 + $0x64] ss:$12 sps:$4 sm:$0xff]   ;;  %v3226_v14 = vld [vmem:[#allocation3 + $0x60] ss:$12 sps:$4 sm:$0xff]  }
  0x30   : > { %v3224_v13 = vld [vmem:[#allocation3 + $0x1e4] ss:$12 sps:$4 sm:$0xff]   ;;  %v3227_v15 = vld [vmem:[#allocation3 + $0x1e0] ss:$12 sps:$4 sm:$0xff]   ;;  %v3232_v18 = vld [vmem:[#allocation3 + $0x48] ss:$12 sps:$4 sm:$0xff]  }
  0x31   : > { %1061 = vmatpush1.bf16.msra.mxu0 %v3214_v6  ;;  %v3228_v16 = vld [vmem:[#allocation3 + $0x4c] ss:$12 sps:$4 sm:$0xff]   ;;  %v3233_v19 = vld [vmem:[#allocation3 + $0x1c8] ss:$12 sps:$4 sm:$0xff]   ;;  %v3238_v22 = vld [vmem:[#allocation3 + $0x30] ss:$12 sps:$4 sm:$0xff]  }
  0x32   : > { %1104 = vmatpush1.bf16.msra.mxu1 %v3215_v7  ;;  %1062 = vmatprep.subr.bf16.mxu0 %v3216_v8  ;;  %v3230_v17 = vld [vmem:[#allocation3 + $0x1cc] ss:$12 sps:$4 sm:$0xff]   ;;  %v3234_v20 = vld [vmem:[#allocation3 + $0x34] ss:$12 sps:$4 sm:$0xff]   ;;  %v3239_v23 = vld [vmem:[#allocation3 + $0x1b0] ss:$12 sps:$4 sm:$0xff]  }
  0x33   : > { %1105 = vmatprep.subr.bf16.mxu1 %v3218_v9  ;;  %v3236_v21 = vld [vmem:[#allocation3 + $0x1b4] ss:$12 sps:$4 sm:$0xff]   ;;  %v3240_v24 = vld [vmem:[#allocation3 + $0x1c] ss:$12 sps:$4 sm:$0xff]   ;;  %v3244_v26 = vld [vmem:[#allocation3 + $0x18] ss:$12 sps:$4 sm:$0xff]  }
  0x34   : > { %v3242_v25 = vld [vmem:[#allocation3 + $0x19c] ss:$12 sps:$4 sm:$0xff]   ;;  %v3245_v27 = vld [vmem:[#allocation3 + $0x198] ss:$12 sps:$4 sm:$0xff]   ;;  %v3250_v30 = vld [vmem:[#allocation3] ss:$12 sps:$4 sm:$0xff]  }
  0x35   : > { %1063 = vmatpush1.bf16.msra.mxu0 %v3220_v10  ;;  %v3246_v28 = vld [vmem:[#allocation3 + $0x4] ss:$12 sps:$4 sm:$0xff]   ;;  %v3251_v31 = vld [vmem:[#allocation3 + $0x180] ss:$12 sps:$4 sm:$0xff]   ;;  %p366_p3 = scmp.lt.s32.totalorder %s3554_s24, 1  ;;  %vm2328_vm12 = vcmask 654336  }
  0x36   : > { %1106 = vmatpush1.bf16.msra.mxu1 %v3221_v11  ;;  %1064 = vmatprep.subr.bf16.mxu0 %v3222_v12  ;;  %v3248_v29 = vld [vmem:[#allocation3 + $0x184] ss:$12 sps:$4 sm:$0xff]   ;;  %v3252_v32 = vld [vmem:[#allocation3 + $0x16c] ss:$12 sps:$4 sm:$0xff]   ;;  %v3256_v34 = vld [vmem:[#allocation3 + $0x168] ss:$12 sps:$4 sm:$0xff]  }
  0x37   : > { %1107 = vmatprep.subr.bf16.mxu1 %v3224_v13  ;;  %v3254_v33 = vld [vmem:[#allocation3 + $0x2ec] ss:$12 sps:$4 sm:$0xff]   ;;  %v3257_v35 = vld [vmem:[#allocation3 + $0x2e8] ss:$12 sps:$4 sm:$0xff]   ;;  %s3986_s24 = smov (!%p366_p3, %s3554_s24), 1  ;;  %vm3569_vm13 = vmmov 0  }
  0x38   : > { %v3258_v36 = vld [vmem:[#allocation3 + $0x154] ss:$12 sps:$4 sm:$0xff]   ;;  %v3262_v38 = vld [vmem:[#allocation3 + $0x150] ss:$12 sps:$4 sm:$0xff]   ;;  %s2909_s21 = sshll.u32 %s3986_s24, 5  ;;  %s3154_s11 = smul.u32 24, %s3986_s24 }
  0x39   : > { %1065 = vmatpush1.bf16.msra.mxu0 %v3226_v14  ;;  %v3260_v37 = vld [vmem:[#allocation3 + $0x2d4] ss:$12 sps:$4 sm:$0xff]   ;;  %v3263_v39 = vld [vmem:[#allocation3 + $0x2d0] ss:$12 sps:$4 sm:$0xff]   ;;  %v3268_v42 = vld [vmem:[#allocation3 + $0x138] ss:$12 sps:$4 sm:$0xff]   ;;  %s3683_s27 = scalar_lea.vmem %s3970_s0, %s2909_s21  ;;  %s3688_s8 = scalar_lea.vmem %s3971_s1, %s2909_s21 }
  0x3a   : > { %1108 = vmatpush1.bf16.msra.mxu1 %v3227_v15  ;;  %1066 = vmatprep.subr.bf16.mxu0 %v3228_v16  ;;  %v3264_v40 = vld [vmem:[#allocation3 + $0x13c] ss:$12 sps:$4 sm:$0xff]   ;;  %v3269_v43 = vld [vmem:[#allocation3 + $0x2b8] ss:$12 sps:$4 sm:$0xff]   ;;  %v3274_v50 = vld [vmem:[#allocation3 + $0x120] ss:$12 sps:$4 sm:$0xff]   ;;  %s3931_s14 = scalar_lea.vmem %s3977_s7, %s3154_s11 }
  0x3b   : > { %1109 = vmatprep.subr.bf16.mxu1 %v3230_v17  ;;  %v3266_v41 = vld [vmem:[#allocation3 + $0x2bc] ss:$12 sps:$4 sm:$0xff]   ;;  %v3270_v44 = vld [vmem:[#allocation3 + $0x124] ss:$12 sps:$4 sm:$0xff]   ;;  %v3275_v51 = vld [vmem:[#allocation3 + $0x2a0] ss:$12 sps:$4 sm:$0xff]  }
  0x3c   : > { %v3272_v45 = vld [vmem:[#allocation3 + $0x2a4] ss:$12 sps:$4 sm:$0xff]   ;;  %v407_v46 = vld [vmem:[%s3683_s27 + $0x8] sm:$0xff]  ;;  %v409_v47 = vld [vmem:[%s3683_s27 + $0x18] sm:$0xff]  ;;  %vm401_vm14 = vcmask 64512   ;;  %vm2446_vm15 = vcmask 39936  }
  0x3d   : > { %1067 = vmatpush1.bf16.msra.mxu0 %v3232_v18  ;;  %v411_v48 = vld [vmem:[%s3688_s8 + $0x8] sm:$0xff]  ;;  %v413_v49 = vld [vmem:[%s3688_s8 + $0x18] sm:$0xff]  ;;  %v3694_v53 = vpack.c.bf16 %v409_v47, %v407_v46  ;;  %v3282_v58 = vld [vmem:[#allocation3 + $0xf4] ss:$12 sps:$4 sm:$0xff]  }
  0x3e   : > { %1110 = vmatpush1.bf16.msra.mxu1 %v3233_v19  ;;  %1068 = vmatprep.subr.bf16.mxu0 %v3234_v20  ;;  %v3276_v52 = vld [vmem:[#allocation3 + $0x10c] ss:$12 sps:$4 sm:$0xff]   ;;  %v3696_v54 = vpack.c.bf16 %v413_v49, %v411_v48  ;;  %v3280_v56 = vld [vmem:[#allocation3 + $0x108] ss:$12 sps:$4 sm:$0xff]   ;;  %v3286_v60 = vld [vmem:[#allocation3 + $0xf0] ss:$12 sps:$4 sm:$0xff]  }
  0x3f   : > { %1111 = vmatprep.subr.bf16.mxu1 %v3236_v21  ;;  %v3278_v55 = vld [vmem:[#allocation3 + $0x28c] ss:$12 sps:$4 sm:$0xff]   ;;  %1090 = vmatprep.mubr.bf16.mxu0 %v3694_v53  ;;  %v3281_v57 = vld [vmem:[#allocation3 + $0x288] ss:$12 sps:$4 sm:$0xff]   ;;  %v3287_v61 = vld [vmem:[#allocation3 + $0x270] ss:$12 sps:$4 sm:$0xff]  }
  0x40   : > { %1133 = vmatprep.mubr.bf16.mxu1 %v3696_v54  ;;  %v3284_v59 = vld [vmem:[#allocation3 + $0x274] ss:$12 sps:$4 sm:$0xff]   ;;  %v3288_v62 = vld [vmem:[#allocation3 + $0xdc] ss:$12 sps:$4 sm:$0xff]   ;;  %v3292_v0 = vld [vmem:[#allocation3 + $0xd8] ss:$12 sps:$4 sm:$0xff]  }
  0x41   : > { %1069 = vmatpush1.bf16.msra.mxu0 %v3238_v22  ;;  %v3290_v63 = vld [vmem:[#allocation3 + $0x25c] ss:$12 sps:$4 sm:$0xff]   ;;  %v3293_v1 = vld [vmem:[#allocation3 + $0x258] ss:$12 sps:$4 sm:$0xff]   ;;  %v3298_v4 = vld [vmem:[#allocation3 + $0xc0] ss:$12 sps:$4 sm:$0xff]  }
  0x42   : > { %1112 = vmatpush1.bf16.msra.mxu1 %v3239_v23  ;;  %1070 = vmatprep.subr.bf16.mxu0 %v3240_v24  ;;  %v3294_v2 = vld [vmem:[#allocation3 + $0xc4] ss:$12 sps:$4 sm:$0xff]   ;;  %v3299_v5 = vld [vmem:[#allocation3 + $0x240] ss:$12 sps:$4 sm:$0xff]   ;;  %v3312_v24 = vld [vmem:[#allocation3 + $0x128] ss:$12 sps:$4 sm:$0xff]  }
  0x43   : > { %1113 = vmatprep.subr.bf16.mxu1 %v3242_v25  ;;  %v3296_v3 = vld [vmem:[#allocation3 + $0x244] ss:$12 sps:$4 sm:$0xff]   ;;  %v3308_v20 = vld [vmem:[#allocation3 + $0x140] ss:$12 sps:$4 sm:$0xff]   ;;  %v3313_v25 = vld [vmem:[#allocation3 + $0x2a8] ss:$12 sps:$4 sm:$0xff]  }
  0x44   : > { %v406_v6 = vld [vmem:[%s3683_s27] sm:$0xff]  ;;  %v408_v7 = vld [vmem:[%s3683_s27 + $0x10] sm:$0xff] }
  0x45   : > { %1071 = vmatpush1.bf16.msra.mxu0 %v3244_v26  ;;  %v410_v8 = vld [vmem:[%s3688_s8] sm:$0xff]  ;;  %v412_v9 = vld [vmem:[%s3688_s8 + $0x10] sm:$0xff]  ;;  %v3704_v13 = vpack.c.bf16 %v408_v7, %v406_v6  ;;  %v3370_v6 = vld [vmem:[#allocation5 + $0x1c] ss:$12 sps:$4 sm:$0xff]  }
  0x46   : > { %1114 = vmatpush1.bf16.msra.mxu1 %v3245_v27  ;;  %1072 = vmatprep.subr.bf16.mxu0 %v3246_v28  ;;  %v3300_v10 = vld [vmem:[#allocation3 + $0x170] ss:$12 sps:$4 sm:$0xff]   ;;  %v3706_v14 = vpack.c.bf16 %v412_v9, %v410_v8  ;;  %v3304_v16 = vld [vmem:[#allocation3 + $0x158] ss:$12 sps:$4 sm:$0xff]   ;;  %v3309_v21 = vld [vmem:[#allocation3 + $0x2c0] ss:$12 sps:$4 sm:$0xff]  }
  0x47   : > { %1115 = vmatprep.subr.bf16.mxu1 %v3248_v29  ;;  %v3301_v11 = vld [vmem:[#allocation3 + $0x2f0] ss:$12 sps:$4 sm:$0xff]   ;;  %v3305_v17 = vld [vmem:[#allocation3 + $0x2d8] ss:$12 sps:$4 sm:$0xff]   ;;  %v3310_v22 = vld [vmem:[#allocation3 + $0x80] ss:$12 sps:$4 sm:$0xff]  }
  0x48   : > { %v3302_v12 = vld [vmem:[#allocation3 + $0xb0] ss:$12 sps:$4 sm:$0xff]   ;;  %v3306_v18 = vld [vmem:[#allocation3 + $0x98] ss:$12 sps:$4 sm:$0xff]   ;;  %v3311_v23 = vld [vmem:[#allocation3 + $0x200] ss:$12 sps:$4 sm:$0xff]  }
  0x49   : > { %1073 = vmatpush1.bf16.msra.mxu0 %v3250_v30  ;;  %v3303_v15 = vld [vmem:[#allocation3 + $0x230] ss:$12 sps:$4 sm:$0xff]   ;;  %v3307_v19 = vld [vmem:[#allocation3 + $0x218] ss:$12 sps:$4 sm:$0xff]   ;;  %v3314_v26 = vld [vmem:[#allocation3 + $0x68] ss:$12 sps:$4 sm:$0xff]  }
  0x4a   : > { %1116 = vmatpush1.bf16.msra.mxu1 %v3251_v31  ;;  %1074 = vmatprep.subr.bf16.mxu0 %v3252_v32  ;;  %v3315_v27 = vld [vmem:[#allocation3 + $0x1e8] ss:$12 sps:$4 sm:$0xff]   ;;  %v3316_v28 = vld [vmem:[#allocation3 + $0x110] ss:$12 sps:$4 sm:$0xff]   ;;  %v3320_v32 = vld [vmem:[#allocation3 + $0xf8] ss:$12 sps:$4 sm:$0xff]  }
  0x4b   : > { %1117 = vmatprep.subr.bf16.mxu1 %v3254_v33  ;;  %v3317_v29 = vld [vmem:[#allocation3 + $0x290] ss:$12 sps:$4 sm:$0xff]   ;;  %v3321_v33 = vld [vmem:[#allocation3 + $0x278] ss:$12 sps:$4 sm:$0xff]   ;;  %v3332_v46 = vld [vmem:[#allocation5 + $0xa8] ss:$12 sps:$4 sm:$0xff]  }
  0x4c   : > { %v3318_v30 = vld [vmem:[#allocation3 + $0x50] ss:$12 sps:$4 sm:$0xff]   ;;  %v3335_v47 = vld [vmem:[#allocation5 + $0x228] ss:$12 sps:$4 sm:$0xff]   ;;  %v3368_v8 = vld [vmem:[#allocation5 + $0x18] ss:$12 sps:$4 sm:$0xff]  }
  0x4d   : > { %1075 = vmatpush2.bf16.msra.mxu0 %v3256_v34  ;;  %v3319_v31 = vld [vmem:[#allocation3 + $0x1d0] ss:$12 sps:$4 sm:$0xff]   ;;  %v3322_v34 = vld [vmem:[#allocation3 + $0x38] ss:$12 sps:$4 sm:$0xff]   ;;  %v3340_v48 = vld [vmem:[#allocation5 + $0x94] ss:$12 sps:$4 sm:$0xff]  }
  0x4e   : > { %1118 = vmatpush2.bf16.msra.mxu1 %v3257_v35  ;;  %1076 = vmatprep.subr.bf16.mxu0 %v3258_v36  ;;  %v3323_v35 = vld [vmem:[#allocation3 + $0x1b8] ss:$12 sps:$4 sm:$0xff]   ;;  %v3324_v36 = vld [vmem:[#allocation3 + $0xe0] ss:$12 sps:$4 sm:$0xff]   ;;  %v3373_v7 = vld [vmem:[#allocation5 + $0x19c] ss:$12 sps:$4 sm:$0xff]  }
  0x4f   : > { %1119 = vmatprep.subr.bf16.mxu1 %v3260_v37  ;;  %v3325_v37 = vld [vmem:[#allocation3 + $0x260] ss:$12 sps:$4 sm:$0xff]   ;;  %v3371_v9 = vld [vmem:[#allocation5 + $0x198] ss:$12 sps:$4 sm:$0xff]  }
  0x50   : > { %v3343_v49 = vld [vmem:[#allocation5 + $0x214] ss:$12 sps:$4 sm:$0xff]  }
  0x51   : > { %1077 = vmatpush2.bf16.msra.mxu0 %v3262_v38  ;;  %v3326_v38 = vld [vmem:[#allocation3 + $0x20] ss:$12 sps:$4 sm:$0xff]  }
  0x52   : > { %1120 = vmatpush2.bf16.msra.mxu1 %v3263_v39  ;;  %1078 = vmatprep.subr.bf16.mxu0 %v3264_v40  ;;  %v3327_v39 = vld [vmem:[#allocation3 + $0x1a0] ss:$12 sps:$4 sm:$0xff]   ;;  %v3328_v40 = vld [vmem:[#allocation3 + $0xc8] ss:$12 sps:$4 sm:$0xff]  }
  0x53   : > { %1121 = vmatprep.subr.bf16.mxu1 %v3266_v41  ;;  %v3329_v41 = vld [vmem:[#allocation3 + $0x248] ss:$12 sps:$4 sm:$0xff]  }
  0x55   : > { %1079 = vmatpush2.bf16.msra.mxu0 %v3268_v42  ;;  %v3330_v42 = vld [vmem:[#allocation3 + $0x8] ss:$12 sps:$4 sm:$0xff]  }
  0x56   : > { %1122 = vmatpush2.bf16.msra.mxu1 %v3269_v43  ;;  %1080 = vmatprep.subr.bf16.mxu0 %v3270_v44  ;;  %v3331_v43 = vld [vmem:[#allocation3 + $0x188] ss:$12 sps:$4 sm:$0xff]   ;;  %v3334_v44 = vld [vmem:[#allocation5 + $0xac] ss:$12 sps:$4 sm:$0xff]  }
  0x57   : > { %1123 = vmatprep.subr.bf16.mxu1 %v3272_v45  ;;  %v3337_v45 = vld [vmem:[#allocation5 + $0x22c] ss:$12 sps:$4 sm:$0xff]  }
  0x59   : > { %1081 = vmatpush2.bf16.msra.mxu0 %v3274_v50  ;;  %v3338_v50 = vld [vmem:[#allocation5 + $0x90] ss:$12 sps:$4 sm:$0xff]  }
  0x5a   : > { %1124 = vmatpush2.bf16.msra.mxu1 %v3275_v51  ;;  %1082 = vmatprep.subr.bf16.mxu0 %v3276_v52  ;;  %v3341_v51 = vld [vmem:[#allocation5 + $0x210] ss:$12 sps:$4 sm:$0xff]  }
  0x5b   : > { %1125 = vmatprep.subr.bf16.mxu1 %v3278_v55  ;;  %v3346_v52 = vld [vmem:[#allocation5 + $0x7c] ss:$12 sps:$4 sm:$0xff]  }
  0x5c   : > { %v3349_v55 = vld [vmem:[#allocation5 + $0x1fc] ss:$12 sps:$4 sm:$0xff]  }
  0x5d   : > { %1083 = vmatpush2.bf16.msra.mxu0 %v3280_v56  ;;  %v3344_v56 = vld [vmem:[#allocation5 + $0x78] ss:$12 sps:$4 sm:$0xff]  }
  0x5e   : > { %1126 = vmatpush2.bf16.msra.mxu1 %v3281_v57  ;;  %1084 = vmatprep.subr.bf16.mxu0 %v3282_v58  ;;  %v3347_v57 = vld [vmem:[#allocation5 + $0x1f8] ss:$12 sps:$4 sm:$0xff]  }
  0x5f   : > { %1127 = vmatprep.subr.bf16.mxu1 %v3284_v59  ;;  %v3352_v58 = vld [vmem:[#allocation5 + $0x64] ss:$12 sps:$4 sm:$0xff]  }
  0x60   : > { %v3355_v59 = vld [vmem:[#allocation5 + $0x1e4] ss:$12 sps:$4 sm:$0xff]  }
  0x61   : > { %1085 = vmatpush2.bf16.msra.mxu0 %v3286_v60  ;;  %v3350_v60 = vld [vmem:[#allocation5 + $0x60] ss:$12 sps:$4 sm:$0xff]  }
  0x62   : > { %1128 = vmatpush2.bf16.msra.mxu1 %v3287_v61  ;;  %1086 = vmatprep.subr.bf16.mxu0 %v3288_v62  ;;  %v3353_v61 = vld [vmem:[#allocation5 + $0x1e0] ss:$12 sps:$4 sm:$0xff]  }
  0x63   : > { %1129 = vmatprep.subr.bf16.mxu1 %v3290_v63  ;;  %v3358_v62 = vld [vmem:[#allocation5 + $0x4c] ss:$12 sps:$4 sm:$0xff]  }
  0x64   : > { %v3361_v63 = vld [vmem:[#allocation5 + $0x1cc] ss:$12 sps:$4 sm:$0xff]  }
  0x65   : > { %1087 = vmatpush2.bf16.msra.mxu0 %v3292_v0  ;;  %v3356_v0 = vld [vmem:[#allocation5 + $0x48] ss:$12 sps:$4 sm:$0xff]  }
  0x66   : > { %1130 = vmatpush2.bf16.msra.mxu1 %v3293_v1  ;;  %1088 = vmatprep.subr.bf16.mxu0 %v3294_v2  ;;  %v3359_v1 = vld [vmem:[#allocation5 + $0x1c8] ss:$12 sps:$4 sm:$0xff]  }
  0x67   : > { %1131 = vmatprep.subr.bf16.mxu1 %v3296_v3  ;;  %v3364_v2 = vld [vmem:[#allocation5 + $0x34] ss:$12 sps:$4 sm:$0xff]  }
  0x68   : > { %v3367_v3 = vld [vmem:[#allocation5 + $0x1b4] ss:$12 sps:$4 sm:$0xff]  }
  0x69   : > { %1089 = vmatpush2.bf16.msra.mxu0 %v3298_v4  ;;  %v3362_v4 = vld [vmem:[#allocation5 + $0x30] ss:$12 sps:$4 sm:$0xff]  }
  0x6a   : > { %1132 = vmatpush2.bf16.msra.mxu1 %v3299_v5  ;;  %2911 = vmatprep.subr.bf16.mxu0 %v3300_v10  ;;  %v3365_v5 = vld [vmem:[#allocation5 + $0x1b0] ss:$12 sps:$4 sm:$0xff]  }
  0x6b   : > { %2933 = vmatprep.subr.bf16.mxu1 %v3301_v11  ;;  %v3376_v10 = vld [vmem:[#allocation5 + $0x4] ss:$12 sps:$4 sm:$0xff]  }
  0x6c   : > { %1091 = vmatmul.mubr.bf16.vlgmr.msra.gmra.mxu0 %v3704_v13  ;;  %v3379_v11 = vld [vmem:[#allocation5 + $0x184] ss:$12 sps:$4 sm:$0xff]  }
  0x6d   : > { %1134 = vmatmul.mubr.bf16.vlgmr.msra.gmra.mxu1 %v3706_v14  ;;  %2912 = vmatpush3.bf16.msra.mxu0 %v3302_v12  ;;  %v3374_v12 = vld [vmem:[#allocation5] ss:$12 sps:$4 sm:$0xff]  }
  0x6e   : > { %2934 = vmatpush3.bf16.msra.mxu1 %v3303_v15  ;;  %2913 = vmatprep.subr.bf16.mxu0 %v3304_v16  ;;  %v3377_v15 = vld [vmem:[#allocation5 + $0x180] ss:$12 sps:$4 sm:$0xff]  }
  0x6f   : > { %2935 = vmatprep.subr.bf16.mxu1 %v3305_v17  ;;  %1176 = vmatprep.mubr.bf16.mxu0 %v3694_v53  ;;  %v3382_v16 = vld [vmem:[#allocation5 + $0x16c] ss:$12 sps:$4 sm:$0xff]  }
  0x70   : > { %1217 = vmatprep.mubr.bf16.mxu1 %v3696_v54  ;;  %v3385_v17 = vld [vmem:[#allocation5 + $0x2ec] ss:$12 sps:$4 sm:$0xff]  }
  0x71   : > { %2914 = vmatpush3.bf16.msra.mxu0 %v3306_v18  ;;  %v3380_v18 = vld [vmem:[#allocation5 + $0x168] ss:$12 sps:$4 sm:$0xff]  }
  0x72   : > { %2936 = vmatpush3.bf16.msra.mxu1 %v3307_v19  ;;  %2915 = vmatprep.subr.bf16.mxu0 %v3308_v20  ;;  %v3383_v19 = vld [vmem:[#allocation5 + $0x2e8] ss:$12 sps:$4 sm:$0xff]  }
  0x73   : > { %2937 = vmatprep.subr.bf16.mxu1 %v3309_v21  ;;  %v3388_v20 = vld [vmem:[#allocation5 + $0x154] ss:$12 sps:$4 sm:$0xff]  }
  0x74   : > { %v3391_v21 = vld [vmem:[#allocation5 + $0x2d4] ss:$12 sps:$4 sm:$0xff]  }
  0x75   : > { %2916 = vmatpush3.bf16.msra.mxu0 %v3310_v22  ;;  %v3386_v22 = vld [vmem:[#allocation5 + $0x150] ss:$12 sps:$4 sm:$0xff]  }
  0x76   : > { %2938 = vmatpush3.bf16.msra.mxu1 %v3311_v23  ;;  %2917 = vmatprep.subr.bf16.mxu0 %v3312_v24  ;;  %v3389_v23 = vld [vmem:[#allocation5 + $0x2d0] ss:$12 sps:$4 sm:$0xff]  }
  0x77   : > { %2939 = vmatprep.subr.bf16.mxu1 %v3313_v25  ;;  %v3394_v24 = vld [vmem:[#allocation5 + $0x13c] ss:$12 sps:$4 sm:$0xff]  }
  0x78   : > { %v3397_v25 = vld [vmem:[#allocation5 + $0x2bc] ss:$12 sps:$4 sm:$0xff]  }
  0x79   : > { %2918 = vmatpush3.bf16.msra.mxu0 %v3314_v26  ;;  %v3392_v26 = vld [vmem:[#allocation5 + $0x138] ss:$12 sps:$4 sm:$0xff]  }
  0x7a   : > { %2940 = vmatpush3.bf16.msra.mxu1 %v3315_v27  ;;  %2919 = vmatprep.subr.bf16.mxu0 %v3316_v28  ;;  %v3395_v27 = vld [vmem:[#allocation5 + $0x2b8] ss:$12 sps:$4 sm:$0xff]  }
  0x7b   : > { %2941 = vmatprep.subr.bf16.mxu1 %v3317_v29  ;;  %v3400_v28 = vld [vmem:[#allocation5 + $0x124] ss:$12 sps:$4 sm:$0xff]  }
  0x7c   : > { %v3403_v29 = vld [vmem:[#allocation5 + $0x2a4] ss:$12 sps:$4 sm:$0xff]  }
  0x7d   : > { %2920 = vmatpush3.bf16.msra.mxu0 %v3318_v30  ;;  %v3398_v30 = vld [vmem:[#allocation5 + $0x120] ss:$12 sps:$4 sm:$0xff]  }
  0x7e   : > { %2942 = vmatpush3.bf16.msra.mxu1 %v3319_v31  ;;  %2921 = vmatprep.subr.bf16.mxu0 %v3320_v32  ;;  %v3401_v31 = vld [vmem:[#allocation5 + $0x2a0] ss:$12 sps:$4 sm:$0xff]  }
  0x7f   : > { %2943 = vmatprep.subr.bf16.mxu1 %v3321_v33  ;;  %v3406_v32 = vld [vmem:[#allocation5 + $0x10c] ss:$12 sps:$4 sm:$0xff]  }
  0x80   : > { %v3409_v33 = vld [vmem:[#allocation5 + $0x28c] ss:$12 sps:$4 sm:$0xff]  }
  0x81   : > { %2922 = vmatpush3.bf16.msra.mxu0 %v3322_v34  ;;  %v3404_v34 = vld [vmem:[#allocation5 + $0x108] ss:$12 sps:$4 sm:$0xff]  }
  0x82   : > { %2944 = vmatpush3.bf16.msra.mxu1 %v3323_v35  ;;  %2923 = vmatprep.subr.bf16.mxu0 %v3324_v36  ;;  %v3407_v35 = vld [vmem:[#allocation5 + $0x288] ss:$12 sps:$4 sm:$0xff]  }
  0x83   : > { %2945 = vmatprep.subr.bf16.mxu1 %v3325_v37  ;;  %v3412_v36 = vld [vmem:[#allocation5 + $0xf4] ss:$12 sps:$4 sm:$0xff]  }
  0x84   : > { %v3415_v37 = vld [vmem:[#allocation5 + $0x274] ss:$12 sps:$4 sm:$0xff]  }
  0x85   : > { %2924 = vmatpush3.bf16.msra.mxu0 %v3326_v38  ;;  %v3410_v38 = vld [vmem:[#allocation5 + $0xf0] ss:$12 sps:$4 sm:$0xff]  }
  0x86   : > { %2946 = vmatpush3.bf16.msra.mxu1 %v3327_v39  ;;  %2925 = vmatprep.subr.bf16.mxu0 %v3328_v40  ;;  %v3413_v39 = vld [vmem:[#allocation5 + $0x270] ss:$12 sps:$4 sm:$0xff]  }
  0x87   : > { %2947 = vmatprep.subr.bf16.mxu1 %v3329_v41  ;;  %v3418_v40 = vld [vmem:[#allocation5 + $0xdc] ss:$12 sps:$4 sm:$0xff]  }
  0x88   : > { %v3421_v41 = vld [vmem:[#allocation5 + $0x25c] ss:$12 sps:$4 sm:$0xff]  }
  0x89   : > { %2926 = vmatpush3.bf16.msra.mxu0 %v3330_v42  ;;  %v3416_v42 = vld [vmem:[#allocation5 + $0xd8] ss:$12 sps:$4 sm:$0xff]  }
  0x8a   : > { %2948 = vmatpush3.bf16.msra.mxu1 %v3331_v43  ;;  %1866 = vmatprep.subr.bf16.mxu0 %v3334_v44  ;;  %v3419_v43 = vld [vmem:[#allocation5 + $0x258] ss:$12 sps:$4 sm:$0xff]  }
  0x8b   : > { %1909 = vmatprep.subr.bf16.mxu1 %v3337_v45  ;;  %v3424_v44 = vld [vmem:[#allocation5 + $0xc4] ss:$12 sps:$4 sm:$0xff]  }
  0x8c   : > { %1177 = vmatmul.mubr.bf16.vlgmr.msra.gmra.mxu0 %v3704_v13  ;;  %v3427_v45 = vld [vmem:[#allocation5 + $0x244] ss:$12 sps:$4 sm:$0xff]  }
  0x8d   : > { %1218 = vmatmul.mubr.bf16.vlgmr.msra.gmra.mxu1 %v3706_v14  ;;  %1867 = vmatpush1.bf16.msra.mxu0 %v3332_v46  ;;  %v3422_v46 = vld [vmem:[#allocation5 + $0xc0] ss:$12 sps:$4 sm:$0xff]  }
  0x8e   : > { %1910 = vmatpush1.bf16.msra.mxu1 %v3335_v47  ;;  %1868 = vmatprep.subr.bf16.mxu0 %v3340_v48  ;;  %v3425_v47 = vld [vmem:[#allocation5 + $0x240] ss:$12 sps:$4 sm:$0xff]   ;;  %v3428_v48 = vld [vmem:[#allocation5 + $0x170] ss:$12 sps:$4 sm:$0xff]  }
  0x8f   : > { %1911 = vmatprep.subr.bf16.mxu1 %v3343_v49  ;;  %1898 = vmatprep.mubr.bf16.mxu0 %v3694_v53  ;;  %v3429_v49 = vld [vmem:[#allocation5 + $0x2f0] ss:$12 sps:$4 sm:$0xff]  }
  0x90   : > { %1941 = vmatprep.mubr.bf16.mxu1 %v3696_v54 }
  0x91   : > { %1869 = vmatpush1.bf16.msra.mxu0 %v3338_v50  ;;  %v3430_v50 = vld [vmem:[#allocation5 + $0xb0] ss:$12 sps:$4 sm:$0xff]  }
  0x92   : > { %1912 = vmatpush1.bf16.msra.mxu1 %v3341_v51  ;;  %1870 = vmatprep.subr.bf16.mxu0 %v3346_v52  ;;  %v3431_v51 = vld [vmem:[#allocation5 + $0x230] ss:$12 sps:$4 sm:$0xff]   ;;  %v3432_v52 = vld [vmem:[#allocation5 + $0x158] ss:$12 sps:$4 sm:$0xff]  }
  0x93   : > { %1913 = vmatprep.subr.bf16.mxu1 %v3349_v55  ;;  %v3433_v55 = vld [vmem:[#allocation5 + $0x2d8] ss:$12 sps:$4 sm:$0xff]  }
  0x95   : > { %1871 = vmatpush1.bf16.msra.mxu0 %v3344_v56  ;;  %v3434_v56 = vld [vmem:[#allocation5 + $0x98] ss:$12 sps:$4 sm:$0xff]  }
  0x96   : > { %1914 = vmatpush1.bf16.msra.mxu1 %v3347_v57  ;;  %1872 = vmatprep.subr.bf16.mxu0 %v3352_v58  ;;  %v3435_v57 = vld [vmem:[#allocation5 + $0x218] ss:$12 sps:$4 sm:$0xff]   ;;  %v3436_v58 = vld [vmem:[#allocation5 + $0x140] ss:$12 sps:$4 sm:$0xff]  }
  0x97   : > { %1915 = vmatprep.subr.bf16.mxu1 %v3355_v59  ;;  %v3437_v59 = vld [vmem:[#allocation5 + $0x2c0] ss:$12 sps:$4 sm:$0xff]  }
  0x99   : > { %1873 = vmatpush1.bf16.msra.mxu0 %v3350_v60  ;;  %v3438_v60 = vld [vmem:[#allocation5 + $0x80] ss:$12 sps:$4 sm:$0xff]  }
  0x9a   : > { %1916 = vmatpush1.bf16.msra.mxu1 %v3353_v61  ;;  %1874 = vmatprep.subr.bf16.mxu0 %v3358_v62  ;;  %v3439_v61 = vld [vmem:[#allocation5 + $0x200] ss:$12 sps:$4 sm:$0xff]   ;;  %v3440_v62 = vld [vmem:[#allocation5 + $0x128] ss:$12 sps:$4 sm:$0xff]  }
  0x9b   : > { %1917 = vmatprep.subr.bf16.mxu1 %v3361_v63  ;;  %v3441_v63 = vld [vmem:[#allocation5 + $0x2a8] ss:$12 sps:$4 sm:$0xff]  }
  0x9d   : > { %1875 = vmatpush1.bf16.msra.mxu0 %v3356_v0  ;;  %v3442_v0 = vld [vmem:[#allocation5 + $0x68] ss:$12 sps:$4 sm:$0xff]  }
  0x9e   : > { %1918 = vmatpush1.bf16.msra.mxu1 %v3359_v1  ;;  %1876 = vmatprep.subr.bf16.mxu0 %v3364_v2  ;;  %v3443_v1 = vld [vmem:[#allocation5 + $0x1e8] ss:$12 sps:$4 sm:$0xff]   ;;  %v3444_v2 = vld [vmem:[#allocation5 + $0x110] ss:$12 sps:$4 sm:$0xff]  }
  0x9f   : > { %1919 = vmatprep.subr.bf16.mxu1 %v3367_v3  ;;  %v3445_v3 = vld [vmem:[#allocation5 + $0x290] ss:$12 sps:$4 sm:$0xff]  }
  0xa1   : > { %1877 = vmatpush1.bf16.msra.mxu0 %v3362_v4  ;;  %v3448_v4 = vld [vmem:[#allocation5 + $0xf8] ss:$12 sps:$4 sm:$0xff]  }
  0xa2   : > { %1920 = vmatpush1.bf16.msra.mxu1 %v3365_v5  ;;  %1878 = vmatprep.subr.bf16.mxu0 %v3370_v6  ;;  %v3449_v5 = vld [vmem:[#allocation5 + $0x278] ss:$12 sps:$4 sm:$0xff]  }
  0xa3   : > { %1921 = vmatprep.subr.bf16.mxu1 %v3373_v7  ;;  %v3450_v6 = vld [vmem:[#allocation5 + $0x38] ss:$12 sps:$4 sm:$0xff]  }
  0xa4   : > { %v3451_v7 = vld [vmem:[#allocation5 + $0x1b8] ss:$12 sps:$4 sm:$0xff]  }
  0xa5   : > { %1879 = vmatpush1.bf16.msra.mxu0 %v3368_v8  ;;  %v3452_v8 = vld [vmem:[#allocation5 + $0xe0] ss:$12 sps:$4 sm:$0xff]  }
  0xa6   : > { %1922 = vmatpush1.bf16.msra.mxu1 %v3371_v9  ;;  %1880 = vmatprep.subr.bf16.mxu0 %v3376_v10  ;;  %v3453_v9 = vld [vmem:[#allocation5 + $0x260] ss:$12 sps:$4 sm:$0xff]  }
  0xa7   : > { %1923 = vmatprep.subr.bf16.mxu1 %v3379_v11  ;;  %v3454_v10 = vld [vmem:[#allocation5 + $0x20] ss:$12 sps:$4 sm:$0xff]  }
  0xa8   : > { %v3455_v11 = vld [vmem:[#allocation5 + $0x1a0] ss:$12 sps:$4 sm:$0xff]  }
  0xa9   : > { %1881 = vmatpush1.bf16.msra.mxu0 %v3374_v12  ;;  %v3456_v12 = vld [vmem:[#allocation5 + $0xc8] ss:$12 sps:$4 sm:$0xff]  }
  0xaa   : > { %1924 = vmatpush1.bf16.msra.mxu1 %v3377_v15  ;;  %1882 = vmatprep.subr.bf16.mxu0 %v3382_v16  ;;  %v3457_v15 = vld [vmem:[#allocation5 + $0x248] ss:$12 sps:$4 sm:$0xff]  }
  0xab   : > { %1925 = vmatprep.subr.bf16.mxu1 %v3385_v17  ;;  %v3458_v16 = vld [vmem:[#allocation5 + $0x8] ss:$12 sps:$4 sm:$0xff]  }
  0xac   : > { %v3459_v17 = vld [vmem:[#allocation5 + $0x188] ss:$12 sps:$4 sm:$0xff]  }
  0xad   : > { %1883 = vmatpush2.bf16.msra.mxu0 %v3380_v18  ;;  %v2125_v18 = vld [vmem:[%s3974_s4 + $0xf8] sm:$0xff] }
  0xae   : > { %1926 = vmatpush2.bf16.msra.mxu1 %v3383_v19  ;;  %1884 = vmatprep.subr.bf16.mxu0 %v3388_v20  ;;  %v2109_v19 = vld [vmem:[%s3974_s4 + $0x78] sm:$0xff]  ;;  %v2124_v20 = vld [vmem:[%s3974_s4 + $0xf0] sm:$0xff] }
  0xaf   : > { %1927 = vmatprep.subr.bf16.mxu1 %v3391_v21  ;;  %v2108_v21 = vld [vmem:[%s3974_s4 + $0x70] sm:$0xff] }
  0xb1   : > { %1885 = vmatpush2.bf16.msra.mxu0 %v3386_v22  ;;  %v2123_v22 = vld [vmem:[%s3974_s4 + $0xe8] sm:$0xff] }
  0xb2   : > { %1928 = vmatpush2.bf16.msra.mxu1 %v3389_v23  ;;  %1886 = vmatprep.subr.bf16.mxu0 %v3394_v24  ;;  %v2107_v23 = vld [vmem:[%s3974_s4 + $0x68] sm:$0xff]  ;;  %v2121_v24 = vld [vmem:[%s3974_s4 + $0xd8] sm:$0xff] }
  0xb3   : > { %1929 = vmatprep.subr.bf16.mxu1 %v3397_v25  ;;  %v2105_v25 = vld [vmem:[%s3974_s4 + $0x58] sm:$0xff] }
  0xb5   : > { %1887 = vmatpush2.bf16.msra.mxu0 %v3392_v26  ;;  %v2120_v26 = vld [vmem:[%s3974_s4 + $0xd0] sm:$0xff] }
  0xb6   : > { %1930 = vmatpush2.bf16.msra.mxu1 %v3395_v27  ;;  %1888 = vmatprep.subr.bf16.mxu0 %v3400_v28  ;;  %v2104_v27 = vld [vmem:[%s3974_s4 + $0x50] sm:$0xff]  ;;  %v2119_v28 = vld [vmem:[%s3974_s4 + $0xc8] sm:$0xff] }
  0xb7   : > { %1931 = vmatprep.subr.bf16.mxu1 %v3403_v29  ;;  %v2103_v29 = vld [vmem:[%s3974_s4 + $0x48] sm:$0xff] }
  0xb9   : > { %1889 = vmatpush2.bf16.msra.mxu0 %v3398_v30  ;;  %v2118_v30 = vld [vmem:[%s3974_s4 + $0xc0] sm:$0xff] }
  0xba   : > { %1932 = vmatpush2.bf16.msra.mxu1 %v3401_v31  ;;  %1890 = vmatprep.subr.bf16.mxu0 %v3406_v32  ;;  %v2102_v31 = vld [vmem:[%s3974_s4 + $0x40] sm:$0xff]  ;;  %v2117_v32 = vld [vmem:[%s3974_s4 + $0xb8] sm:$0xff] }
  0xbb   : > { %1933 = vmatprep.subr.bf16.mxu1 %v3409_v33  ;;  %v2101_v33 = vld [vmem:[%s3974_s4 + $0x38] sm:$0xff] }
  0xbd   : > { %1891 = vmatpush2.bf16.msra.mxu0 %v3404_v34  ;;  %v2116_v34 = vld [vmem:[%s3974_s4 + $0xb0] sm:$0xff] }
  0xbe   : > { %1934 = vmatpush2.bf16.msra.mxu1 %v3407_v35  ;;  %1892 = vmatprep.subr.bf16.mxu0 %v3412_v36  ;;  %v2100_v35 = vld [vmem:[%s3974_s4 + $0x30] sm:$0xff]  ;;  %v2115_v36 = vld [vmem:[%s3974_s4 + $0xa8] sm:$0xff] }
  0xbf   : > { %1935 = vmatprep.subr.bf16.mxu1 %v3415_v37  ;;  %v2099_v37 = vld [vmem:[%s3974_s4 + $0x28] sm:$0xff] }
  0xc1   : > { %1893 = vmatpush2.bf16.msra.mxu0 %v3410_v38  ;;  %v2114_v38 = vld [vmem:[%s3974_s4 + $0xa0] sm:$0xff] }
  0xc2   : > { %1936 = vmatpush2.bf16.msra.mxu1 %v3413_v39  ;;  %1894 = vmatprep.subr.bf16.mxu0 %v3418_v40  ;;  %v2098_v39 = vld [vmem:[%s3974_s4 + $0x20] sm:$0xff]  ;;  %v2113_v40 = vld [vmem:[%s3974_s4 + $0x98] sm:$0xff] }
  0xc3   : > { %1937 = vmatprep.subr.bf16.mxu1 %v3421_v41  ;;  %v2097_v41 = vld [vmem:[%s3974_s4 + $0x18] sm:$0xff] }
  0xc5   : > { %1895 = vmatpush2.bf16.msra.mxu0 %v3416_v42  ;;  %v2112_v42 = vld [vmem:[%s3974_s4 + $0x90] sm:$0xff] }
  0xc6   : > { %1938 = vmatpush2.bf16.msra.mxu1 %v3419_v43  ;;  %1896 = vmatprep.subr.bf16.mxu0 %v3424_v44  ;;  %v2096_v43 = vld [vmem:[%s3974_s4 + $0x10] sm:$0xff]  ;;  %v2111_v44 = vld [vmem:[%s3974_s4 + $0x88] sm:$0xff] }
  0xc7   : > { %1939 = vmatprep.subr.bf16.mxu1 %v3427_v45  ;;  %v2095_v45 = vld [vmem:[%s3974_s4 + $0x8] sm:$0xff] }
  0xc9   : > { %1897 = vmatpush2.bf16.msra.mxu0 %v3422_v46  ;;  %v2110_v46 = vld [vmem:[%s3974_s4 + $0x80] sm:$0xff] }
  0xca   : > { %1940 = vmatpush2.bf16.msra.mxu1 %v3425_v47  ;;  %2955 = vmatprep.subr.bf16.mxu0 %v3428_v48  ;;  %v2094_v47 = vld [vmem:[%s3974_s4] sm:$0xff]  ;;  %v2141_v48 = vld [vmem:[%s3974_s4 + $0x178] sm:$0xff] }
  0xcb   : > { %2977 = vmatprep.subr.bf16.mxu1 %v3429_v49  ;;  %v2140_v49 = vld [vmem:[%s3974_s4 + $0x170] sm:$0xff] }
  0xcc   : > { %1899 = vmatmul.mubr.bf16.vlgmr.msra.gmra.mxu0 %v3704_v13 }
  0xcd   : > { %1942 = vmatmul.mubr.bf16.vlgmr.msra.gmra.mxu1 %v3706_v14  ;;  %2956 = vmatpush3.bf16.msra.mxu0 %v3430_v50  ;;  %v2139_v50 = vld [vmem:[%s3974_s4 + $0x168] sm:$0xff] }
  0xce   : > { %2978 = vmatpush3.bf16.msra.mxu1 %v3431_v51  ;;  %2957 = vmatprep.subr.bf16.mxu0 %v3432_v52  ;;  %v2138_v51 = vld [vmem:[%s3974_s4 + $0x160] sm:$0xff]  ;;  %v2137_v52 = vld [vmem:[%s3974_s4 + $0x158] sm:$0xff] }
  0xcf   : > { %2979 = vmatprep.subr.bf16.mxu1 %v3433_v55  ;;  %1984 = vmatprep.mubr.bf16.mxu0 %v3694_v53  ;;  %v3446_v53 = vld [vmem:[#allocation5 + $0x50] ss:$12 sps:$4 sm:$0xff]   ;;  %v2136_v55 = vld [vmem:[%s3974_s4 + $0x150] sm:$0xff] }
  0xd0   : > { %2025 = vmatprep.mubr.bf16.mxu1 %v3696_v54  ;;  %v3447_v54 = vld [vmem:[#allocation5 + $0x1d0] ss:$12 sps:$4 sm:$0xff]  }
  0xd1   : > { %2958 = vmatpush3.bf16.msra.mxu0 %v3434_v56  ;;  %v2135_v56 = vld [vmem:[%s3974_s4 + $0x148] sm:$0xff] }
  0xd2   : > { %2980 = vmatpush3.bf16.msra.mxu1 %v3435_v57  ;;  %2959 = vmatprep.subr.bf16.mxu0 %v3436_v58  ;;  %v2134_v57 = vld [vmem:[%s3974_s4 + $0x140] sm:$0xff]  ;;  %v2133_v58 = vld [vmem:[%s3974_s4 + $0x138] sm:$0xff] }
  0xd3   : > { %2981 = vmatprep.subr.bf16.mxu1 %v3437_v59  ;;  %v2132_v59 = vld [vmem:[%s3974_s4 + $0x130] sm:$0xff] }
  0xd5   : > { %2960 = vmatpush3.bf16.msra.mxu0 %v3438_v60  ;;  %v2131_v60 = vld [vmem:[%s3974_s4 + $0x128] sm:$0xff] }
  0xd6   : > { %2982 = vmatpush3.bf16.msra.mxu1 %v3439_v61  ;;  %2961 = vmatprep.subr.bf16.mxu0 %v3440_v62  ;;  %v2130_v61 = vld [vmem:[%s3974_s4 + $0x120] sm:$0xff]  ;;  %v2129_v62 = vld [vmem:[%s3974_s4 + $0x118] sm:$0xff] }
  0xd7   : > { %2983 = vmatprep.subr.bf16.mxu1 %v3441_v63  ;;  %v2128_v63 = vld [vmem:[%s3974_s4 + $0x110] sm:$0xff] }
  0xd9   : > { %2962 = vmatpush3.bf16.msra.mxu0 %v3442_v0  ;;  %v2127_v0 = vld [vmem:[%s3974_s4 + $0x108] sm:$0xff] }
  0xda   : > { %2984 = vmatpush3.bf16.msra.mxu1 %v3443_v1  ;;  %2963 = vmatprep.subr.bf16.mxu0 %v3444_v2  ;;  %v2126_v1 = vld [vmem:[%s3974_s4 + $0x100] sm:$0xff] }
  0xdb   : > { %2985 = vmatprep.subr.bf16.mxu1 %v3445_v3 }
  0xdd   : > { %2964 = vmatpush3.bf16.msra.mxu0 %v3446_v53 }
  0xde   : > { %2986 = vmatpush3.bf16.msra.mxu1 %v3447_v54  ;;  %2965 = vmatprep.subr.bf16.mxu0 %v3448_v4 }
  0xdf   : > { %2987 = vmatprep.subr.bf16.mxu1 %v3449_v5 }
  0xe1   : > { %2966 = vmatpush3.bf16.msra.mxu0 %v3450_v6 }
  0xe2   : > { %2988 = vmatpush3.bf16.msra.mxu1 %v3451_v7  ;;  %2967 = vmatprep.subr.bf16.mxu0 %v3452_v8 }
  0xe3   : > { %2989 = vmatprep.subr.bf16.mxu1 %v3453_v9 }
  0xe5   : > { %2968 = vmatpush3.bf16.msra.mxu0 %v3454_v10 }
  0xe6   : > { %2990 = vmatpush3.bf16.msra.mxu1 %v3455_v11  ;;  %2969 = vmatprep.subr.bf16.mxu0 %v3456_v12 }
  0xe7   : > { %2991 = vmatprep.subr.bf16.mxu1 %v3457_v15 }
  0xe9   : > { %2970 = vmatpush3.bf16.msra.mxu0 %v3458_v16 }
  0xea   : > { %2992 = vmatpush3.bf16.msra.mxu1 %v3459_v17  ;;  %2999 = vmatprep.subr.mxu0 %v2125_v18 }
  0xeb   : > { %3080 = vmatprep.subr.mxu1 %v2141_v48 }
  0xec   : > { %1985 = vmatmul.mubr.bf16.vlgmr.msra.gmra.mxu0 %v3704_v13  ;;  %v2122_v13 = vld [vmem:[%s3974_s4 + $0xe0] sm:$0xff] }
  0xed   : > { %2026 = vmatmul.mubr.bf16.vlgmr.msra.gmra.mxu1 %v3706_v14  ;;  %3000 = vmatpush3.msra.mxu0 %v2109_v19  ;;  %v2106_v14 = vld [vmem:[%s3974_s4 + $0x60] sm:$0xff] }
  0xee   : > { %3001 = vmatprep.subr.mxu0 %v2124_v20  ;;  %3081 = vmatpush3.msra.mxu1 %v2141_v48 }
  0xef   : > { %3002 = vmatpush3.msra.mxu0 %v2108_v21  ;;  %3082 = vmatprep.subr.mxu1 %v2140_v49 }
  0xf0   : > { %3003 = vmatprep.subr.mxu0 %v2123_v22  ;;  %3083 = vmatpush3.msra.mxu1 %v2140_v49 }
  0xf1   : > { %3004 = vmatpush3.msra.mxu0 %v2107_v23  ;;  %3084 = vmatprep.subr.mxu1 %v2139_v50 }
  0xf2   : > { %3005 = vmatprep.subr.mxu0 %v2122_v13  ;;  %3085 = vmatpush3.msra.mxu1 %v2139_v50 }
  0xf3   : > { %3006 = vmatpush3.msra.mxu0 %v2106_v14  ;;  %3086 = vmatprep.subr.mxu1 %v2138_v51 }
  0xf4   : > { %3007 = vmatprep.subr.mxu0 %v2121_v24  ;;  %3087 = vmatpush3.msra.mxu1 %v2138_v51 }
  0xf5   : > { %3008 = vmatpush3.msra.mxu0 %v2105_v25  ;;  %3088 = vmatprep.subr.mxu1 %v2137_v52 }
  0xf6   : > { %3009 = vmatprep.subr.mxu0 %v2120_v26  ;;  %3089 = vmatpush3.msra.mxu1 %v2137_v52 }
  0xf7   : > { %3010 = vmatpush3.msra.mxu0 %v2104_v27  ;;  %3090 = vmatprep.subr.mxu1 %v2136_v55 }
  0xf8   : > { %3011 = vmatprep.subr.mxu0 %v2119_v28  ;;  %3091 = vmatpush3.msra.mxu1 %v2136_v55 }
  0xf9   : > { %3012 = vmatpush3.msra.mxu0 %v2103_v29  ;;  %3092 = vmatprep.subr.mxu1 %v2135_v56 }
  0xfa   : > { %3013 = vmatprep.subr.mxu0 %v2118_v30  ;;  %3093 = vmatpush3.msra.mxu1 %v2135_v56 }
  0xfb   : > { %3014 = vmatpush3.msra.mxu0 %v2102_v31  ;;  %3094 = vmatprep.subr.mxu1 %v2134_v57 }
  0xfc   : > { %3015 = vmatprep.subr.mxu0 %v2117_v32  ;;  %3095 = vmatpush3.msra.mxu1 %v2134_v57 }
  0xfd   : > { %3016 = vmatpush3.msra.mxu0 %v2101_v33  ;;  %3096 = vmatprep.subr.mxu1 %v2133_v58 }
  0xfe   : > { %3017 = vmatprep.subr.mxu0 %v2116_v34  ;;  %3097 = vmatpush3.msra.mxu1 %v2133_v58 }
  0xff   : > { %3018 = vmatpush3.msra.mxu0 %v2100_v35  ;;  %3098 = vmatprep.subr.mxu1 %v2132_v59 }
 0x100   : > { %3019 = vmatprep.subr.mxu0 %v2115_v36  ;;  %3099 = vmatpush3.msra.mxu1 %v2132_v59 }
 0x101   : > { %3020 = vmatpush3.msra.mxu0 %v2099_v37  ;;  %3100 = vmatprep.subr.mxu1 %v2131_v60 }
 0x102   : > { %3021 = vmatprep.subr.mxu0 %v2114_v38  ;;  %3101 = vmatpush3.msra.mxu1 %v2131_v60 }
 0x103   : > { %3022 = vmatpush3.msra.mxu0 %v2098_v39  ;;  %3102 = vmatprep.subr.mxu1 %v2130_v61 }
 0x104   : > { %3023 = vmatprep.subr.mxu0 %v2113_v40  ;;  %3103 = vmatpush3.msra.mxu1 %v2130_v61 }
 0x105   : > { %3024 = vmatpush3.msra.mxu0 %v2097_v41  ;;  %3104 = vmatprep.subr.mxu1 %v2129_v62 }
 0x106   : > { %3025 = vmatprep.subr.mxu0 %v2112_v42  ;;  %3105 = vmatpush3.msra.mxu1 %v2129_v62 }
 0x107   : > { %3026 = vmatpush3.msra.mxu0 %v2096_v43  ;;  %3106 = vmatprep.subr.mxu1 %v2128_v63 }
 0x108   : > { %3027 = vmatprep.subr.mxu0 %v2111_v44  ;;  %3107 = vmatpush3.msra.mxu1 %v2128_v63 }
 0x109   : > { %3028 = vmatpush3.msra.mxu0 %v2095_v45  ;;  %3108 = vmatprep.subr.mxu1 %v2127_v0 }
 0x10a   : > { %3029 = vmatprep.subr.mxu0 %v2110_v46  ;;  %3109 = vmatpush3.msra.mxu1 %v2127_v0 }
 0x10b   : > { %3030 = vmatpush3.msra.mxu0 %v2094_v47  ;;  %3110 = vmatprep.subr.mxu1 %v2126_v1 }
 0x10c   : > { %3111 = vmatpush3.msra.mxu1 %v2126_v1 }
 0x12c   : > { %v1092_v2 = vpop.f32.mrf.mxu0 }
 0x12d   : > { %v1135_v3 = vpop.f32.mrf.mxu1 }
 0x12e   : > { %v1094_v53 = vpop.f32.mrf.mxu0  ;;  %v1136_v18 = vadd.f32 %v1135_v3, %v1092_v2 }
 0x12f   : > { %v1137_v54 = vpop.f32.mrf.mxu1 }
 0x130   : > { %v1096_v4 = vpop.f32.mrf.mxu0  ;;  %v1138_v19 = vadd.f32 %v1137_v54, %v1094_v53  ;;  %v2034_v24 = vmul.f32 %v1136_v18, %v1136_v18 }
 0x131   : > { %v1139_v5 = vpop.f32.mrf.mxu1 }
 0x132   : > { %v1098_v6 = vpop.f32.mrf.mxu0  ;;  %v1140_v23 = vadd.f32 %v1139_v5, %v1096_v4  ;;  %v2035_v27 = vmul.f32 %v1138_v19, %v1138_v19 }
 0x133   : > { %v1141_v7 = vpop.f32.mrf.mxu1 }
 0x134   : > { %v1142_v30 = vadd.f32 %v1141_v7, %v1098_v6  ;;  %v2037_v34 = vmul.f32 %v1140_v23, %v1140_v23 }
 0x136   : > { %v2038_v40 = vmul.f32 %v1142_v30, %v1142_v30 }
 0x14c   : > { %v3866_v8 = vpop.f32.mrf.mxu0 }
 0x14d   : > { %v3868_v9 = vpop.f32.mrf.mxu1 }
 0x14e   : > { %v3870_v10 = vpop.f32.mrf.mxu0 }
 0x14f   : > { %v3872_v11 = vpop.f32.mrf.mxu1  ;;  %v2929_v0 = vadd.f32 %v3870_v10, %v3866_v8 }
 0x150   : > { %v3874_v12 = vpop.f32.mrf.mxu0  ;;  %v2951_v1 = vadd.f32 %v3872_v11, %v3868_v9 }
 0x151   : > { %v3876_v15 = vpop.f32.mrf.mxu1 }
 0x152   : > { %v3878_v16 = vpop.f32.mrf.mxu0  ;;  %v1220_v4 = vadd.f32 %v2951_v1, %v2929_v0 }
 0x153   : > { %v3880_v17 = vpop.f32.mrf.mxu1  ;;  %v2932_v7 = vadd.f32 %v3878_v16, %v3874_v12 }
 0x154   : > { %v2954_v8 = vadd.f32 %v3880_v17, %v3876_v15 }
 0x156   : > { %v1223_v23 = vadd.f32 %v2954_v8, %v2932_v7 }
 0x158   : > { %v2039_v16 = vmul.f32 %v1223_v23, %v1223_v23 }
 0x18c   : > { %v1900_v20 = vpop.f32.mrf.mxu0 }
 0x18d   : > { %v1943_v21 = vpop.f32.mrf.mxu1 }
 0x18e   : > { %v1944_v22 = vadd.f32 %v1943_v21, %v1900_v20  ;;  %v1902_v13 = vpop.f32.mrf.mxu0  ;;  %v2036_v20 = vmul.f32 %v1220_v4, %v1220_v4 }
 0x18f   : > { %v1945_v14 = vpop.f32.mrf.mxu1 }
 0x190   : > { %v2040_v25 = vmul.f32 %v1944_v22, %v1944_v22  ;;  %v1946_v26 = vadd.f32 %v1945_v14, %v1902_v13  ;;  %v1904_v28 = vpop.f32.mrf.mxu0 }
 0x191   : > { %v1947_v29 = vpop.f32.mrf.mxu1 }
 0x192   : > { %v2046_v31 = vadd.f32 %v2040_v25, %v2034_v24  ;;  %v2041_v32 = vmul.f32 %v1946_v26, %v1946_v26  ;;  %v1948_v33 = vadd.f32 %v1947_v29, %v1904_v28  ;;  %v1906_v35 = vpop.f32.mrf.mxu0 }
 0x193   : > { %v1949_v36 = vpop.f32.mrf.mxu1 }
 0x194   : > { %v2047_v37 = vadd.f32 %v2041_v32, %v2035_v27  ;;  %v2043_v38 = vmul.f32 %v1948_v33, %v1948_v33  ;;  %v1950_v39 = vadd.f32 %v1949_v36, %v1906_v35  ;;  %3460 = vrsqrt.f32 %v2046_v31  ;;  %v2327_v36 = vld [vmem:[%s3975_s5 + $0x48] sm:$0xff] }
 0x195   : > { %vm2054_vm0 = vcmp.eq.f32.partialorder %v2046_v31, inf  ;;  %v2057_v52 = vand.u32 2147483648, %v2046_v31  ;;  %vm2056_vm3 = vcmp.eq.f32.partialorder %v2046_v31, 0.0  ;;  %3118 = vmatprep.subr.mxu0 %v2327_v36 }
 0x196   : > { %v2049_v41 = vadd.f32 %v2043_v38, %v2037_v34  ;;  %v2044_v42 = vmul.f32 %v1950_v39, %v1950_v39  ;;  %3462 = vrsqrt.f32 %v2047_v37  ;;  %vm2061_vm1 = vcmp.eq.f32.partialorder %v2047_v37, inf  ;;  %v2325_v38 = vld [vmem:[%s3975_s5 + $0x38] sm:$0xff]  ;;  %v2324_v39 = vld [vmem:[%s3975_s5 + $0x30] sm:$0xff] }
 0x197   : > { %v2064_v49 = vand.u32 2147483648, %v2047_v37  ;;  %vm2063_vm2 = vcmp.eq.f32.partialorder %v2047_v37, 0.0 }
 0x198   : > { %v2050_v43 = vadd.f32 %v2044_v42, %v2038_v40  ;;  %3464 = vrsqrt.f32 %v2049_v41  ;;  %vm2075_vm4 = vcmp.eq.f32.partialorder %v2049_v41, inf  ;;  %v2078_v63 = vand.u32 2147483648, %v2049_v41  ;;  %v2323_v40 = vld [vmem:[%s3975_s5 + $0x28] sm:$0xff]  ;;  %v2321_v42 = vld [vmem:[%s3975_s5 + $0x18] sm:$0xff] }
 0x199   : > { %vm2077_vm7 = vcmp.eq.f32.partialorder %v2049_v41, 0.0 }
 0x19a   : > { %3466 = vrsqrt.f32 %v2050_v43  ;;  %vm2082_vm5 = vcmp.eq.f32.partialorder %v2050_v43, inf  ;;  %v2085_v60 = vand.u32 2147483648, %v2050_v43  ;;  %vm2084_vm6 = vcmp.eq.f32.partialorder %v2050_v43, 0.0 }
 0x1a1   : > { %v3461_v44 = vpop.eup %3460 }
 0x1a2   : > { %v2053_v45 = vmul.f32 %v3461_v44, %v2046_v31  ;;  %v2319_v44 = vld [vmem:[%s3975_s5 + $0x8] sm:$0xff] }
 0x1a3   : > { %v3463_v46 = vpop.eup %3462 }
 0x1a4   : > { %v2060_v47 = vmul.f32 %v3463_v46, %v2047_v37  ;;  %v2055_v50 = vsel %vm2054_vm0, %v2046_v31, %v2053_v45  ;;  %v2318_v45 = vld [vmem:[%s3975_s5] sm:$0xff]  ;;  %vm2449_vm0 = vcmask 48168  }
 0x1a5   : > { %v3465_v48 = vpop.eup %3464  ;;  %v2058_v58 = vsel %vm2056_vm3, %v2057_v52, %v2055_v50 }
 0x1a6   : > { %v2062_v51 = vsel %vm2061_vm1, %v2047_v37, %v2060_v47  ;;  %v2074_v55 = vmul.f32 %v3465_v48, %v2049_v41  ;;  %vm2452_vm1 = vcmask 56368  }
 0x1a7   : > { %v3467_v56 = vpop.eup %3466  ;;  %v2065_v57 = vsel %vm2063_vm2, %v2064_v49, %v2062_v51 }
 0x1a8   : > { %2206 = vmatprep.mubr.f32.mxu0 %v2065_v57  ;;  %v2081_v59 = vmul.f32 %v3467_v56, %v2050_v43  ;;  %v2076_v61 = vsel %vm2075_vm4, %v2049_v41, %v2074_v55  ;;  %vm2455_vm4 = vcmask 64568  }
 0x1a9   : > { %2207 = vmatmul.mubr.f32.vlgmr.msra.gmra.mxu0 %v2058_v58  ;;  %v2079_v3 = vsel %vm2077_vm7, %v2078_v63, %v2076_v61  ;;  %vm2466_vm7 = vcmask 130048  }
 0x1aa   : > { %v2083_v62 = vsel %vm2082_vm5, %v2050_v43, %v2081_v59  ;;  %3119 = vmatpush3.msra.mxu0 %v2327_v36 }
 0x1ab   : > { %v2086_v2 = vsel %vm2084_vm6, %v2085_v60, %v2083_v62 }
 0x1ac   : > { %2211 = vmatprep.mubr.f32.mxu0 %v2086_v2  ;;  %v2971_v53 = vpop.f32.mrf.mxu0 }
 0x1ad   : > { %v2993_v54 = vpop.f32.mrf.mxu1  ;;  %2212 = vmatmul.mubr.f32.gmra.mxu0 %v2079_v3 }
 0x1ae   : > { %2216 = vmatprep.mubr.f32.mxu0 %v2047_v37  ;;  %v2972_v5 = vpop.f32.mrf.mxu0  ;;  %v2326_v37 = vld [vmem:[%s3975_s5 + $0x40] sm:$0xff] }
 0x1af   : > { %v2994_v6 = vpop.f32.mrf.mxu1  ;;  %v2973_v10 = vadd.f32 %v2972_v5, %v2971_v53  ;;  %3120 = vmatprep.subr.mxu0 %v2326_v37 }
 0x1b0   : > { %v2995_v18 = vadd.f32 %v2994_v6, %v2993_v54  ;;  %v2974_v9 = vpop.f32.mrf.mxu0  ;;  %3121 = vmatpush3.msra.mxu0 %v2326_v37 }
 0x1b1   : > { %v2996_v11 = vpop.f32.mrf.mxu1  ;;  %2217 = vmatmul.mubr.f32.gmra.mxu0 %v2046_v31  ;;  %3122 = vmatprep.subr.mxu0 %v2325_v38 }
 0x1b2   : > { %v2028_v19 = vadd.f32 %v2995_v18, %v2973_v10  ;;  %2221 = vmatprep.mubr.f32.mxu0 %v2050_v43  ;;  %v2975_v21 = vpop.f32.mrf.mxu0  ;;  %3123 = vmatpush3.msra.mxu0 %v2325_v38  ;;  %v2320_v43 = vld [vmem:[%s3975_s5 + $0x10] sm:$0xff]  ;;  %v2461_v38 = vld [vmem:[%s3976_s6] sm:$0xff] }
 0x1b3   : > { %v2997_v22 = vpop.f32.mrf.mxu1  ;;  %v2976_v14 = vadd.f32 %v2975_v21, %v2974_v9  ;;  %3124 = vmatprep.subr.mxu0 %v2324_v39 }
 0x1b4   : > { %v2042_v13 = vmul.f32 %v2028_v19, %v2028_v19  ;;  %v2998_v24 = vadd.f32 %v2997_v22, %v2996_v11  ;;  %3125 = vmatpush3.msra.mxu0 %v2324_v39 }
 0x1b5   : > { %2222 = vmatmul.mubr.f32.gmra.mxu0 %v2049_v41  ;;  %3126 = vmatprep.subr.mxu0 %v2323_v40  ;;  %v2322_v41 = vld [vmem:[%s3975_s5 + $0x20] sm:$0xff] }
 0x1b6   : > { %v2048_v25 = vadd.f32 %v2042_v13, %v2036_v20  ;;  %v2031_v12 = vadd.f32 %v2998_v24, %v2976_v14  ;;  %3127 = vmatpush3.msra.mxu0 %v2323_v40  ;;  %v3568_v24 = vmov 0.0   ;;  %v2462_v40 = vld [vmem:[%s3976_s6 + $0x8] sm:$0xff] }
 0x1b7   : > { %3128 = vmatprep.subr.mxu0 %v2322_v41  ;;  %3141 = vmatprep.subr.mxu1 %v3568_v24  ;;  %402 = vst.msk [vmem:[%s3931_s14] sm:$0xff] %vm401_vm14, %v3568_v24  ;;  %403 = vst.msk [vmem:[%s3931_s14 + $0x8] sm:$0xff] %vm401_vm14, %v3568_v24 }
 0x1b8   : > { %v2045_v26 = vmul.f32 %v2031_v12, %v2031_v12  ;;  %3468 = vrsqrt.f32 %v2048_v25  ;;  %vm2068_vm8 = vcmp.eq.f32.partialorder %v2048_v25, inf  ;;  %v2071_v28 = vand.u32 2147483648, %v2048_v25  ;;  %3129 = vmatpush3.msra.mxu0 %v2322_v41  ;;  %v2463_v41 = vld [vmem:[%s3976_s6 + $0x10] sm:$0xf] }
 0x1b9   : > { %vm2070_vm9 = vcmp.eq.f32.partialorder %v2048_v25, 0.0  ;;  %3130 = vmatprep.subr.mxu0 %v2321_v42 }
 0x1ba   : > { %v2051_v15 = vadd.f32 %v2045_v26, %v2039_v16  ;;  %3131 = vmatpush3.msra.mxu0 %v2321_v42 }
 0x1bb   : > { %3132 = vmatprep.subr.mxu0 %v2320_v43 }
 0x1bc   : > { %3470 = vrsqrt.f32 %v2051_v15  ;;  %vm2089_vm10 = vcmp.eq.f32.partialorder %v2051_v15, inf  ;;  %v2092_v33 = vand.u32 2147483648, %v2051_v15  ;;  %vm2091_vm11 = vcmp.eq.f32.partialorder %v2051_v15, 0.0  ;;  %3133 = vmatpush3.msra.mxu0 %v2320_v43 }
 0x1bd   : > { %3134 = vmatprep.subr.mxu0 %v2319_v44 }
 0x1be   : > { %3135 = vmatpush3.msra.mxu0 %v2319_v44  ;;  %v2458_v42 = vld [vmem:[%s3931_s14] sm:$0xff] }
 0x1bf   : > { %3136 = vmatprep.subr.mxu0 %v2318_v45 }
 0x1c0   : > { %3137 = vmatpush3.msra.mxu0 %v2318_v45 }
 0x1c5   : > { %v3469_v17 = vpop.eup %3468 }
 0x1c6   : > { %v2067_v27 = vmul.f32 %v3469_v17, %v2048_v25 }
 0x1c8   : > { %v2069_v29 = vsel %vm2068_vm8, %v2048_v25, %v2067_v27  ;;  %vm404_vm8 = vcmask 60416  }
 0x1c9   : > { %v3471_v30 = vpop.eup %3470  ;;  %v2072_v31 = vsel %vm2070_vm9, %v2071_v28, %v2069_v29  ;;  %405 = vst.msk [vmem:[%s3931_s14 + $0x10] sm:$0xf] %vm404_vm8, %v3568_v24 }
 0x1ca   : > { %3112 = vmatprep.mubr.f32.mxu1 %v2072_v31  ;;  %v2088_v32 = vmul.f32 %v3471_v30, %v2051_v15 }
 0x1cc   : > { %v2090_v34 = vsel %vm2089_vm10, %v2051_v15, %v2088_v32 }
 0x1cd   : > { %v2093_v35 = vsel %vm2091_vm11, %v2092_v33, %v2090_v34 }
 0x1ce   : > { %3113 = vmatmul.mubr.f32.vlgmr.msra.gmra.mxu1 %v2093_v35 }
 0x1cf   : > { %3115 = vmatprep.mubr.f32.mxu1 %v2048_v25 }
 0x1d2   : > { %3116 = vmatmul.mubr.f32.gmra.mxu1 %v2051_v15 }
 0x1d3   : > { %3145 = vmatprep.mubr.msk.f32.mxu1 %vm3569_vm13, %v3568_v24 }
 0x269   : > { %v3031_v46 = vpop.f32.mrf.mxu0 }
 0x26b   : > { %v3032_v47 = vpop.f32.mrf.mxu0 }
 0x26c   : > { %v3033_v58 = vadd.f32 %v3032_v47, %v3031_v46  ;;  %v2459_v46 = vld [vmem:[%s3931_s14 + $0x8] sm:$0xff] }
 0x26d   : > { %v3034_v48 = vpop.f32.mrf.mxu0 }
 0x26f   : > { %v3035_v49 = vpop.f32.mrf.mxu0 }
 0x270   : > { %v3036_v55 = vadd.f32 %v3035_v49, %v3034_v48 }
 0x271   : > { %v3037_v50 = vpop.f32.mrf.mxu0 }
 0x273   : > { %v3038_v51 = vpop.f32.mrf.mxu0 }
 0x274   : > { %v3039_v1 = vadd.f32 %v3038_v51, %v3037_v50  ;;  %v2460_v50 = vld [vmem:[%s3931_s14 + $0x10] sm:$0xf] }
 0x275   : > { %v3040_v52 = vpop.f32.mrf.mxu0 }
 0x277   : > { %v3041_v56 = vpop.f32.mrf.mxu0 }
 0x278   : > { %v3042_v61 = vadd.f32 %v3041_v56, %v3040_v52 }
 0x28e   : > { %v3114_v57 = vpop.f32.mrf.mxu1 }
 0x28f   : > { %v2299_v59 = vadd.f32 %v3114_v57, %v3036_v55 }
 0x290   : > { %v2293_v60 = vpop.f32.mrf.mxu1 }
 0x291   : > { %v2294_v62 = vadd.f32 %v3033_v58, %v2293_v60  ;;  %v2413_v63 = vsel %vm2328_vm12, %v2299_v59, 0.0 }
 0x292   : > { %v3117_v0 = vpop.f32.mrf.mxu1  ;;  %2414 = vadd.xlane.f32.xlu0 %v2413_v63 }
 0x293   : > { %v2309_v2 = vadd.f32 %v3117_v0, %v3042_v61  ;;  %v2410_v4 = vsel %vm2328_vm12, %v2294_v62, 0.0 }
 0x294   : > { %v2303_v3 = vpop.f32.mrf.mxu1 }
 0x295   : > { %v2313_v53 = vadd.f32 1e-06, %v2309_v2  ;;  %v2304_v54 = vadd.f32 %v3039_v1, %v2303_v3 }
 0x296   : > { %2411 = vadd.xlane.f32.xlu0 %v2410_v4 }
 0x297   : > { %v2312_v5 = vadd.f32 1e-06, %v2304_v54  ;;  %3472 = vlog2.f32 %v2313_v53 }
 0x299   : > { %3474 = vlog2.f32 %v2312_v5 }
 0x2a4   : > { %v3473_v6 = vpop.eup %3472 }
 0x2a5   : > { %v2317_v10 = vmul.f32 0.6931472, %v3473_v6 }
 0x2a6   : > { %v3475_v7 = vpop.eup %3474 }
 0x2a7   : > { %v2315_v8 = vmul.f32 0.6931472, %v3475_v7 }
 0x2a9   : > { %3138 = vmatprep.mubr.msk.f32.mxu0 %vm2328_vm12, %v2315_v8 }
 0x2aa   : > { %3139 = vmatmul.mubr.msk.f32.vlgmr.msra.gmra.mxu0 %vm2328_vm12, %v2317_v10 }
 0x31b   : > { %v2415_v18 = vpop.xlane.xlu0 %2414 }
 0x31c   : > { %v2418_v9 = vmul.f32 0.0125, %v2415_v18 }
 0x31e   : > { %v2420_v11 = vsub.f32 %v2299_v59, %v2418_v9 }
 0x31f   : > { %v2412_v19 = vpop.xlane.xlu0 %2411 }
 0x320   : > { %v2417_v20 = vmul.f32 0.0125, %v2412_v19  ;;  %v2422_v21 = vmul.f32 %v2420_v11, %v2420_v11 }
 0x322   : > { %v2419_v22 = vsub.f32 %v2294_v62, %v2417_v20  ;;  %v2426_v23 = vsel %vm2328_vm12, %v2422_v21, 0.0 }
 0x323   : > { %2427 = vadd.xlane.f32.xlu1 %v2426_v23 }
 0x324   : > { %v2421_v13 = vmul.f32 %v2419_v22, %v2419_v22 }
 0x326   : > { %v2423_v14 = vsel %vm2328_vm12, %v2421_v13, 0.0 }
 0x327   : > { %2424 = vadd.xlane.f32.xlu1 %v2423_v14 }
 0x36a   : > { %v3140_v25 = vpop.f32.mrf.mxu0 }
 0x36b   : > { %2448 = vst.msk [vmem:[#allocation2 + $0x8] sm:$0xff] %vm2446_vm15, %v3140_v25 }
 0x36c   : > { %2451 = vst.msk [vmem:[#allocation2 + $0x8] sm:$0xff] %vm2449_vm0, %v2418_v9  ;;  %v2401_v12 = vpop.f32.mrf.mxu0 }
 0x36d   : > { %2447 = vst.msk [vmem:[#allocation2] sm:$0xff] %vm2446_vm15, %v2401_v12 }
 0x36e   : > { %2450 = vst.msk [vmem:[#allocation2] sm:$0xff] %vm2449_vm0, %v2417_v20 }
 0x3ac   : > { %v2428_v16 = vpop.xlane.xlu1 %2427 }
 0x3ad   : > { %v2431_v26 = vmul.f32 0.012658228, %v2428_v16 }
 0x3af   : > { %3476 = vrsqrt.f32 %v2431_v26  ;;  %vm2441_vm2 = vcmp.eq.f32.partialorder %v2431_v26, inf  ;;  %v2444_v29 = vand.u32 2147483648, %v2431_v26  ;;  %vm2443_vm3 = vcmp.eq.f32.partialorder %v2431_v26, 0.0 }
 0x3b0   : > { %v2425_v15 = vpop.xlane.xlu1 %2424 }
 0x3b1   : > { %v2430_v17 = vmul.f32 0.012658228, %v2425_v15 }
 0x3b3   : > { %3478 = vrsqrt.f32 %v2430_v17  ;;  %vm2434_vm5 = vcmp.eq.f32.partialorder %v2430_v17, inf  ;;  %v2437_v34 = vand.u32 2147483648, %v2430_v17  ;;  %vm2436_vm6 = vcmp.eq.f32.partialorder %v2430_v17, 0.0 }
 0x3bc   : > { %v3477_v27 = vpop.eup %3476 }
 0x3bd   : > { %v2440_v28 = vmul.f32 %v3477_v27, %v2431_v26 }
 0x3bf   : > { %v2442_v30 = vsel %vm2441_vm2, %v2431_v26, %v2440_v28 }
 0x3c0   : > { %v3479_v31 = vpop.eup %3478  ;;  %v2445_v32 = vsel %vm2443_vm3, %v2444_v29, %v2442_v30 }
 0x3c1   : > { %2454 = vst.msk [vmem:[#allocation2 + $0x8] sm:$0xff] %vm2452_vm1, %v2445_v32  ;;  %v2433_v33 = vmul.f32 %v3479_v31, %v2430_v17 }
 0x3c2   : > { %2457 = vst.msk [vmem:[#allocation2 + $0x8] sm:$0xff] %vm2455_vm4, %v3568_v24 }
 0x3c3   : > { %v2435_v35 = vsel %vm2434_vm5, %v2430_v17, %v2433_v33 }
 0x3c4   : > { %v2438_v36 = vsel %vm2436_vm6, %v2437_v34, %v2435_v35 }
 0x3c5   : > { %2453 = vst.msk [vmem:[#allocation2] sm:$0xff] %vm2452_vm1, %v2438_v36 }
 0x3c6   : > { %2456 = vst.msk [vmem:[#allocation2] sm:$0xff] %vm2455_vm4, %v3568_v24 }
 0x3c9   : > { %v2465_v37 = vld [vmem:[#allocation2 + $0x8] sm:$0xff] }
 0x3ca   : > { %3142 = vmatpush3.msra.mxu1 %v2465_v37 }
 0x3cb   : > { %3143 = vmatprep.subr.mxu1 %v3568_v24 }
 0x3cd   : > { %v2464_v39 = vld [vmem:[#allocation2] sm:$0xff] }
 0x3ce   : > { %3144 = vmatpush3.msra.mxu1 %v2464_v39 }
 0x3cf   : > { %3146 = vmatmul.mubr.msk.f32.vlgmr.msra.gmra.mxu1 %vm2466_vm7, %v2461_v38 }
 0x3d0   : > { %3148 = vmatprep.mubr.msk.f32.mxu1 %vm3569_vm13, %v3568_v24 }
 0x3d3   : > { %3149 = vmatmul.mubr.msk.f32.gmra.mxu1 %vm2466_vm7, %v2462_v40 }
 0x3d4   : > { %3151 = vmatprep.mubr.msk.f32.mxu1 %vm3569_vm13, %v3568_v24 }
 0x3d7   : > { %3152 = vmatmul.mubr.msk.f32.gmra.mxu1 %vm2466_vm7, %v2463_v41 }
 0x48f   : > { %v2542_v43 = vpop.f32.mrf.mxu1 }
 0x490   : > { %v2556_v44 = vadd.f32 %v2542_v43, %v2458_v42 }
 0x491   : > { %v3147_v45 = vpop.f32.mrf.mxu1 }
 0x492   : > { %2560 = vst.msk [vmem:[%s3931_s14] sm:$0xff] %vm401_vm14, %v2556_v44 }
 0x493   : > { %v2547_v47 = vpop.f32.mrf.mxu1 }
 0x494   : > { %v2557_v48 = vadd.f32 %v2547_v47, %v2459_v46 }
 0x495   : > { %v3150_v49 = vpop.f32.mrf.mxu1 }
 0x496   : > { %2561 = vst.msk [vmem:[%s3931_s14 + $0x8] sm:$0xff] %vm401_vm14, %v2557_v48 }
 0x497   : > { %v2552_v51 = vpop.f32.mrf.mxu1 }
 0x498   : > { %v2558_v52 = vadd.f32 %v2552_v51, %v2460_v50 }
 0x499   : > { %v3153_v55 = vpop.f32.mrf.mxu1 }
 0x49a   : > { %2563 = vst.msk [vmem:[%s3931_s14 + $0x10] sm:$0xf] %vm404_vm8, %v2558_v52 }
 0x49b PF: > { %s19_s26 = sadd.s32 1, %s3562_s26   ;;  %s3981_s24 = smov %s3558_s25 }
 0x49c   : > { %p16_p4 = scmp.ge.s32.totalorder %s19_s26, 4   ;;  %s3982_s25 = smov %s3984_s28 }
 0x49e   :  { %18 = sbr.rel (!%p16_p4) target bundleno = 3 (0x3), region = 97 }
 0x4a3   :  { %2585 = vsyncpa [#allocation4], 1 }
 0x4a4   :  { %2587 = vsyncpa [#allocation4 + $0x1], 1 }
 0x4a5   :  { %2588 = vsyncpa [#allocation6], 1 }

</bundles_post_ra>
